<compile_context>
chip_gen: v7x
topology: tpu7x:2x2x1
jax: 0.10.0
libtpu: 0.0.40
codegen_flags: <defaults>
</compile_context>

<pallas_src>
import jax
import jax.numpy as jnp
from jax.experimental import pallas as pl
from jax.experimental.pallas import tpu as pltpu


_VMEM = pl.BlockSpec(memory_space=pltpu.MemorySpace.VMEM)


# ----------------------------------------------------------------------------
# Fused encoder kernel (single pallas_call for the whole forward pass)
# ----------------------------------------------------------------------------

def _build_encoder_kernel(n_layers, mlp_n_layers, skip_connection):
    """Build a Pallas kernel computing the whole Encoder forward in one call.

    Positional ref layout:
      [src_col, dst_col, dst_row, x, edge_attr, *param_leaves,
       node_out, edge_out]
    param_leaves ordering must match _flatten_params below.
    """
    leaves_per_mlp = 2 * mlp_n_layers + 2 * (mlp_n_layers - 1)
    n_param_leaves = n_layers * 2 * leaves_per_mlp

    def kernel(*refs):
        src_col_ref, dst_col_ref, dst_row_ref, x_ref, e_ref = refs[:5]
        param_refs = refs[5:5 + n_param_leaves]
        node_out_ref, edge_out_ref = refs[5 + n_param_leaves:]

        x0 = x_ref[...]                       # [N, F_node_in]
        e0 = e_ref[...]                       # [E, F_edge_in]
        n_nodes, n_edges = x0.shape[0], e0.shape[0]

        # Incidence masks built in-register from the int32 edge indices:
        # no [E, N] one-hot ever touches HBM and no transpose is materialized.
        # They are computed once and reused by every GNN layer.
        col_ids = jax.lax.broadcasted_iota(jnp.int32, (n_edges, n_nodes), 1)
        row_ids = jax.lax.broadcasted_iota(jnp.int32, (n_nodes, n_edges), 0)
        src_oh = (src_col_ref[...] == col_ids).astype(jnp.float32)    # [E, N]
        dst_oh = (dst_col_ref[...] == col_ids).astype(jnp.float32)    # [E, N]
        dst_oh_t = (dst_row_ref[...] == row_ids).astype(jnp.float32)  # [N, E]
        # TODO(synk): at real graph sizes replace this masked-matmul
        # gather/scatter with a scalar-prefetched index gather + segment
        # accumulation over an edge-tile grid ("parallel" axis for 2 TCs on
        # v7x); at N=16 / E=32 the masks live entirely in vregs.

        # ---- static unpacking of the flat parameter ref list ---------------
        pos = [0]

        def _next():
            r = param_refs[pos[0]]
            pos[0] += 1
            return r

        def read_mlp():
            layers = []
            for i in range(mlp_n_layers):
                w_ref, b_ref = _next(), _next()
                if i < mlp_n_layers - 1:
                    g_ref, beta_ref = _next(), _next()
                else:
                    g_ref = beta_ref = None
                layers.append((w_ref, b_ref, g_ref, beta_ref))
            return layers

        layer_mlps = [(read_mlp(), read_mlp()) for _ in range(n_layers)]

        # ---- fused compute helpers (all values stay in VMEM / vregs) -------
        def layernorm(h, g, beta):
            mu = jnp.mean(h, axis=-1, keepdims=True)
            var = jnp.mean((h - mu) ** 2, axis=-1, keepdims=True)
            return (h - mu) * jax.lax.rsqrt(var + 1e-5) * g + beta

        def mlp_apply(mlp, inputs):
            # First Linear without concatenation: split W0 by rows and sum the
            # per-input partial matmuls into a single f32 accumulator.
            w0_ref, b0_ref, g0_ref, beta0_ref = mlp[0]
            w0 = w0_ref[...]
            off, h = 0, None
            for inp in inputs:
                k = inp.shape[1]
                if k == 1:
                    # degenerate K=1 contraction -> cheap VPU outer product
                    part = inp * w0[off:off + 1, :]
                else:
                    part = jnp.dot(inp, w0[off:off + k, :],
                                   preferred_element_type=jnp.float32)
                h = part if h is None else h + part
                off += k
            h = h + b0_ref[...]
            if mlp_n_layers > 1:
                h = jnp.maximum(h, 0.0)
                h = layernorm(h, g0_ref[...], beta0_ref[...])
            for i in range(1, mlp_n_layers):
                w_ref, b_ref, g_ref, beta_ref = mlp[i]
                h = jnp.dot(h, w_ref[...],
                            preferred_element_type=jnp.float32) + b_ref[...]
                if i < mlp_n_layers - 1:
                    h = jnp.maximum(h, 0.0)
                    h = layernorm(h, g_ref[...], beta_ref[...])
            return h

        def gnn_layer(mlps, x, e, skip):
            edge_mlp, node_mlp = mlps
            # gather rows of x for edge endpoints (MXU, mask in vregs)
            x_src = jnp.dot(src_oh, x, preferred_element_type=jnp.float32)
            x_dst = jnp.dot(dst_oh, x, preferred_element_type=jnp.float32)
            e_out = mlp_apply(edge_mlp, [x_src, x_dst, e])
            # scatter-add edge messages onto dst nodes
            agg = jnp.dot(dst_oh_t, e_out, preferred_element_type=jnp.float32)
            x_out = mlp_apply(node_mlp, [x, agg])
            if skip:
                if x_out.shape == x.shape:
                    x_out = x_out + x
                if e_out.shape == e.shape:
                    e_out = e_out + e
            return x_out, e_out

        # ---- encoder forward (matches the PyTorch Encoder.forward) ---------
        xh, eh = gnn_layer(layer_mlps[0], x0, e0, skip=False)
        for l in range(1, n_layers - 1):
            # TODO(synk): PyTorch reference may or may not double-apply the
            # residual (internal GnnSparse skip + encoder-level add); kept
            # identical to the previous implementation's semantics.
            xn, en = gnn_layer(layer_mlps[l], xh, eh, skip=skip_connection)
            xh = xh + xn
            eh = eh + en
        xo, eo = gnn_layer(layer_mlps[n_layers - 1], xh, eh, skip=False)

        node_out_ref[...] = xo
        edge_out_ref[...] = eo

    return kernel


# ----------------------------------------------------------------------------
# Parameter flattening & forward wrapper
# ----------------------------------------------------------------------------

def _flatten_params(params):
    leaves = []
    for layer in params:
        for mlp_key in ("edge_mlp", "node_mlp"):
            mlp = layer[mlp_key]
            nl = len(mlp["w"])
            for i in range(nl):
                leaves.append(mlp["w"][i].astype(jnp.float32))
                leaves.append(mlp["b"][i].reshape(1, -1).astype(jnp.float32))
                if i < nl - 1:
                    leaves.append(
                        mlp["ln_g"][i].reshape(1, -1).astype(jnp.float32))
                    leaves.append(
                        mlp["ln_b"][i].reshape(1, -1).astype(jnp.float32))
    return leaves


def encoder_forward(params, x, edge_index, edge_attr, skip_connection=True):
    n_layers = len(params)
    mlp_n_layers = len(params[0]["edge_mlp"]["w"])
    n_nodes = x.shape[0]
    n_edges = edge_attr.shape[0]
    nz_out = params[-1]["node_mlp"]["w"][-1].shape[1]
    edge_out_dim = params[-1]["edge_mlp"]["w"][-1].shape[1]

    # Glue: index arrays in the two layouts the kernel needs (row / column).
    src_col = edge_index[0].reshape(n_edges, 1).astype(jnp.int32)
    dst_col = edge_index[1].reshape(n_edges, 1).astype(jnp.int32)
    dst_row = edge_index[1].reshape(1, n_edges).astype(jnp.int32)

    leaves = _flatten_params(params)
    kernel = _build_encoder_kernel(n_layers, mlp_n_layers,
                                   bool(skip_connection))

    n_inputs = 5 + len(leaves)
    node_out, edge_out = pl.pallas_call(
        kernel,
        out_shape=(jax.ShapeDtypeStruct((n_nodes, nz_out), jnp.float32),
                   jax.ShapeDtypeStruct((n_edges, edge_out_dim), jnp.float32)),
        in_specs=[_VMEM] * n_inputs,
        out_specs=(_VMEM, _VMEM),
    )(src_col, dst_col, dst_row,
      x.astype(jnp.float32), edge_attr.astype(jnp.float32), *leaves)
    return node_out, edge_out


encoder_forward_jit = jax.jit(encoder_forward,
                              static_argnames=("skip_connection",))


# ----------------------------------------------------------------------------
# Deterministic parameter initialization
# ----------------------------------------------------------------------------

def _init_linear(key, din, dout):
    kw, kb = jax.random.split(key)
    scale = float(din) ** -0.5
    w = jax.random.uniform(kw, (din, dout), jnp.float32, -scale, scale)
    b = jax.random.uniform(kb, (dout,), jnp.float32, -scale, scale)
    return w, b


def _init_mlp(key, din, hidden, dout, n_layers):
    dims = [din] + [hidden] * (n_layers - 1) + [dout]
    ws, bs, gs, betas = [], [], [], []
    keys = jax.random.split(key, n_layers)
    for i in range(n_layers):
        w, b = _init_linear(keys[i], dims[i], dims[i + 1])
        ws.append(w)
        bs.append(b)
        if i < n_layers - 1:  # layernorm on hidden layers only
            gs.append(jnp.ones((dims[i + 1],), jnp.float32))
            betas.append(jnp.zeros((dims[i + 1],), jnp.float32))
    return {"w": ws, "b": bs, "ln_g": gs, "ln_b": betas}


def _init_gnn_sparse(key, node_in, edge_in, node_out, edge_out,
                     mlp_n_layers, mlp_hidden):
    ke, kn = jax.random.split(key)
    return {
        "edge_mlp": _init_mlp(ke, 2 * node_in + edge_in, mlp_hidden, edge_out,
                              mlp_n_layers),
        "node_mlp": _init_mlp(kn, node_in + edge_out, mlp_hidden, node_out,
                              mlp_n_layers),
    }


def init_encoder(key, nnf, nef, nhf, nz, n_layers, mlp_n_layers, mlp_hidden):
    keys = jax.random.split(key, n_layers)
    layers = [_init_gnn_sparse(keys[0], nnf, nef, nhf, nhf,
                               mlp_n_layers, mlp_hidden)]
    for i in range(1, n_layers - 1):
        layers.append(_init_gnn_sparse(keys[i], nhf, nhf, nhf, nhf,
                                       mlp_n_layers, mlp_hidden))
    layers.append(_init_gnn_sparse(keys[n_layers - 1], nhf, nhf, nz, 1,
                                   mlp_n_layers, mlp_hidden))
    return layers


# ----------------------------------------------------------------------------
# Main
# ----------------------------------------------------------------------------

if __name__ == "__main__":
    # Small synthetic "config" / "data_info"
    N_NODE_FEAT, ADD_NODE_FEAT = 6, 2        # nnf = 8
    N_EDGE_FEAT, ADD_EDGE_FEAT = 3, 1        # nef = 4
    NNF = N_NODE_FEAT + ADD_NODE_FEAT
    NEF = N_EDGE_FEAT + ADD_EDGE_FEAT
    NHF = 32                                  # encoder hidden size
    NZ = 16                                   # quantizer latent size
    N_LAYERS = 3
    MLP_N_LAYERS = 2
    MLP_HIDDEN = 32
    SKIP_CONNECTION = True

    N_NODES, N_EDGES = 16, 32

    key = jax.random.PRNGKey(0)
    kx, ke, ka, kp = jax.random.split(key, 4)

    x = jax.random.normal(kx, (N_NODES, NNF), jnp.float32)
    edge_index = jax.random.randint(ke, (2, N_EDGES), 0, N_NODES,
                                    dtype=jnp.int32)
    edge_attr = jax.random.normal(ka, (N_EDGES, NEF), jnp.float32)

    params = init_encoder(kp, NNF, NEF, NHF, NZ, N_LAYERS,
                          MLP_N_LAYERS, MLP_HIDDEN)

    node_out, edge_out = encoder_forward_jit(
        params, x, edge_index, edge_attr, skip_connection=SKIP_CONNECTION)
    jax.block_until_ready((node_out, edge_out))

    assert node_out.shape == (N_NODES, NZ), node_out.shape
    assert edge_out.shape == (N_EDGES, 1), edge_out.shape
    assert node_out.dtype == jnp.float32 and edge_out.dtype == jnp.float32
    assert bool(jnp.all(jnp.isfinite(node_out)))
    assert bool(jnp.all(jnp.isfinite(edge_out)))

    print("KERNEL_OK")
</pallas_src>

<mosaic_0001>
module attributes {stable_mosaic.version = 11 : i64} {
  func.func @kernel(%arg0: memref<32x1xi32, #tpu.memory_space<vmem>>, %arg1: memref<32x1xi32, #tpu.memory_space<vmem>>, %arg2: memref<1x32xi32, #tpu.memory_space<vmem>>, %arg3: memref<16x8xf32, #tpu.memory_space<vmem>>, %arg4: memref<32x4xf32, #tpu.memory_space<vmem>>, %arg5: memref<20x32xf32, #tpu.memory_space<vmem>>, %arg6: memref<1x32xf32, #tpu.memory_space<vmem>>, %arg7: memref<1x32xf32, #tpu.memory_space<vmem>>, %arg8: memref<1x32xf32, #tpu.memory_space<vmem>>, %arg9: memref<32x32xf32, #tpu.memory_space<vmem>>, %arg10: memref<1x32xf32, #tpu.memory_space<vmem>>, %arg11: memref<40x32xf32, #tpu.memory_space<vmem>>, %arg12: memref<1x32xf32, #tpu.memory_space<vmem>>, %arg13: memref<1x32xf32, #tpu.memory_space<vmem>>, %arg14: memref<1x32xf32, #tpu.memory_space<vmem>>, %arg15: memref<32x32xf32, #tpu.memory_space<vmem>>, %arg16: memref<1x32xf32, #tpu.memory_space<vmem>>, %arg17: memref<96x32xf32, #tpu.memory_space<vmem>>, %arg18: memref<1x32xf32, #tpu.memory_space<vmem>>, %arg19: memref<1x32xf32, #tpu.memory_space<vmem>>, %arg20: memref<1x32xf32, #tpu.memory_space<vmem>>, %arg21: memref<32x32xf32, #tpu.memory_space<vmem>>, %arg22: memref<1x32xf32, #tpu.memory_space<vmem>>, %arg23: memref<64x32xf32, #tpu.memory_space<vmem>>, %arg24: memref<1x32xf32, #tpu.memory_space<vmem>>, %arg25: memref<1x32xf32, #tpu.memory_space<vmem>>, %arg26: memref<1x32xf32, #tpu.memory_space<vmem>>, %arg27: memref<32x32xf32, #tpu.memory_space<vmem>>, %arg28: memref<1x32xf32, #tpu.memory_space<vmem>>, %arg29: memref<96x32xf32, #tpu.memory_space<vmem>>, %arg30: memref<1x32xf32, #tpu.memory_space<vmem>>, %arg31: memref<1x32xf32, #tpu.memory_space<vmem>>, %arg32: memref<1x32xf32, #tpu.memory_space<vmem>>, %arg33: memref<32x1xf32, #tpu.memory_space<vmem>>, %arg34: memref<1x1xf32, #tpu.memory_space<vmem>>, %arg35: memref<33x32xf32, #tpu.memory_space<vmem>>, %arg36: memref<1x32xf32, #tpu.memory_space<vmem>>, %arg37: memref<1x32xf32, #tpu.memory_space<vmem>>, %arg38: memref<1x32xf32, #tpu.memory_space<vmem>>, %arg39: memref<32x16xf32, #tpu.memory_space<vmem>>, %arg40: memref<1x16xf32, #tpu.memory_space<vmem>>, %arg41: memref<16x16xf32, #tpu.memory_space<vmem>>, %arg42: memref<32x1xf32, #tpu.memory_space<vmem>>) attributes {dimension_semantics = [], scalar_prefetch = 0 : i64, scratch_operands = 0 : i64, tpu.core_type = #tpu.core_type<tc>} {
    %c0 = arith.constant 0 : index
    %c0_0 = arith.constant 0 : index
    %0 = vector.load %arg3[%c0, %c0_0] : memref<16x8xf32, #tpu.memory_space<vmem>>, vector<16x8xf32>
    %c0_1 = arith.constant 0 : index
    %c0_2 = arith.constant 0 : index
    %1 = vector.load %arg4[%c0_1, %c0_2] : memref<32x4xf32, #tpu.memory_space<vmem>>, vector<32x4xf32>
    %2 = tpu.iota {dimensions = array<i32: 1>} : vector<32x16xi32>
    %3 = tpu.iota {dimensions = array<i32: 0>} : vector<16x32xi32>
    %c0_3 = arith.constant 0 : index
    %c0_4 = arith.constant 0 : index
    %4 = vector.load %arg0[%c0_3, %c0_4] : memref<32x1xi32, #tpu.memory_space<vmem>>, vector<32x1xi32>
    %5 = vector.broadcast %4 : vector<32x1xi32> to vector<32x16xi32>
    %6 = arith.cmpi eq, %5, %2 : vector<32x16xi32>
    %7 = arith.extui %6 : vector<32x16xi1> to vector<32x16xi32>
    %8 = arith.sitofp %7 : vector<32x16xi32> to vector<32x16xf32>
    %c0_5 = arith.constant 0 : index
    %c0_6 = arith.constant 0 : index
    %9 = vector.load %arg1[%c0_5, %c0_6] : memref<32x1xi32, #tpu.memory_space<vmem>>, vector<32x1xi32>
    %10 = vector.broadcast %9 : vector<32x1xi32> to vector<32x16xi32>
    %11 = arith.cmpi eq, %10, %2 : vector<32x16xi32>
    %12 = arith.extui %11 : vector<32x16xi1> to vector<32x16xi32>
    %13 = arith.sitofp %12 : vector<32x16xi32> to vector<32x16xf32>
    %c0_7 = arith.constant 0 : index
    %c0_8 = arith.constant 0 : index
    %14 = vector.load %arg2[%c0_7, %c0_8] : memref<1x32xi32, #tpu.memory_space<vmem>>, vector<1x32xi32>
    %15 = vector.broadcast %14 : vector<1x32xi32> to vector<16x32xi32>
    %16 = arith.cmpi eq, %15, %3 : vector<16x32xi32>
    %17 = arith.extui %16 : vector<16x32xi1> to vector<16x32xi32>
    %18 = arith.sitofp %17 : vector<16x32xi32> to vector<16x32xf32>
    %cst = arith.constant dense<0.000000e+00> : vector<32x8xf32>
    %19 = tpu.matmul %8, %0, %cst {dimension_numbers = #tpu.dot_dimension_numbers<[1], [0], [0], [1], [0, 0, 1, 1], [], []>} : vector<32x16xf32>, vector<16x8xf32>, vector<32x8xf32> -> vector<32x8xf32>
    %cst_9 = arith.constant dense<0.000000e+00> : vector<32x8xf32>
    %20 = tpu.matmul %13, %0, %cst_9 {dimension_numbers = #tpu.dot_dimension_numbers<[1], [0], [0], [1], [0, 0, 1, 1], [], []>} : vector<32x16xf32>, vector<16x8xf32>, vector<32x8xf32> -> vector<32x8xf32>
    %c0_10 = arith.constant 0 : index
    %c0_11 = arith.constant 0 : index
    %21 = vector.load %arg5[%c0_10, %c0_11] : memref<20x32xf32, #tpu.memory_space<vmem>>, vector<20x32xf32>
    %22 = vector.extract_strided_slice %21 {offsets = [0, 0], sizes = [8, 32], strides = [1, 1]} : vector<20x32xf32> to vector<8x32xf32>
    %cst_12 = arith.constant dense<0.000000e+00> : vector<32x32xf32>
    %23 = tpu.matmul %19, %22, %cst_12 {dimension_numbers = #tpu.dot_dimension_numbers<[1], [0], [0], [1], [0, 0, 1, 1], [], []>} : vector<32x8xf32>, vector<8x32xf32>, vector<32x32xf32> -> vector<32x32xf32>
    %24 = vector.extract_strided_slice %21 {offsets = [8, 0], sizes = [8, 32], strides = [1, 1]} : vector<20x32xf32> to vector<8x32xf32>
    %cst_13 = arith.constant dense<0.000000e+00> : vector<32x32xf32>
    %25 = tpu.matmul %20, %24, %cst_13 {dimension_numbers = #tpu.dot_dimension_numbers<[1], [0], [0], [1], [0, 0, 1, 1], [], []>} : vector<32x8xf32>, vector<8x32xf32>, vector<32x32xf32> -> vector<32x32xf32>
    %26 = arith.addf %23, %25 : vector<32x32xf32>
    %27 = vector.extract_strided_slice %21 {offsets = [16, 0], sizes = [4, 32], strides = [1, 1]} : vector<20x32xf32> to vector<4x32xf32>
    %cst_14 = arith.constant dense<0.000000e+00> : vector<32x32xf32>
    %28 = tpu.matmul %1, %27, %cst_14 {dimension_numbers = #tpu.dot_dimension_numbers<[1], [0], [0], [1], [0, 0, 1, 1], [], []>} : vector<32x4xf32>, vector<4x32xf32>, vector<32x32xf32> -> vector<32x32xf32>
    %29 = arith.addf %26, %28 : vector<32x32xf32>
    %c0_15 = arith.constant 0 : index
    %c0_16 = arith.constant 0 : index
    %30 = vector.load %arg6[%c0_15, %c0_16] : memref<1x32xf32, #tpu.memory_space<vmem>>, vector<1x32xf32>
    %31 = vector.broadcast %30 : vector<1x32xf32> to vector<32x32xf32>
    %32 = arith.addf %29, %31 : vector<32x32xf32>
    %cst_17 = arith.constant 0.000000e+00 : f32
    %33 = vector.broadcast %cst_17 : f32 to vector<32x32xf32>
    %34 = arith.maximumf %32, %33 : vector<32x32xf32>
    %c0_18 = arith.constant 0 : index
    %c0_19 = arith.constant 0 : index
    %35 = vector.load %arg7[%c0_18, %c0_19] : memref<1x32xf32, #tpu.memory_space<vmem>>, vector<1x32xf32>
    %c0_20 = arith.constant 0 : index
    %c0_21 = arith.constant 0 : index
    %36 = vector.load %arg8[%c0_20, %c0_21] : memref<1x32xf32, #tpu.memory_space<vmem>>, vector<1x32xf32>
    %cst_22 = arith.constant dense<0.000000e+00> : vector<32xf32>
    %37 = vector.multi_reduction <add>, %34, %cst_22 [1] : vector<32x32xf32> to vector<32xf32>
    %38 = vector.shape_cast %37 : vector<32xf32> to vector<32x1xf32>
    %cst_23 = arith.constant 3.200000e+01 : f32
    %39 = vector.broadcast %cst_23 : f32 to vector<32x1xf32>
    %40 = arith.divf %38, %39 : vector<32x1xf32>
    %41 = vector.broadcast %40 : vector<32x1xf32> to vector<32x32xf32>
    %42 = arith.subf %34, %41 : vector<32x32xf32>
    %43 = arith.mulf %42, %42 : vector<32x32xf32>
    %cst_24 = arith.constant dense<0.000000e+00> : vector<32xf32>
    %44 = vector.multi_reduction <add>, %43, %cst_24 [1] : vector<32x32xf32> to vector<32xf32>
    %45 = vector.shape_cast %44 : vector<32xf32> to vector<32x1xf32>
    %cst_25 = arith.constant 3.200000e+01 : f32
    %46 = vector.broadcast %cst_25 : f32 to vector<32x1xf32>
    %47 = arith.divf %45, %46 : vector<32x1xf32>
    %48 = vector.broadcast %40 : vector<32x1xf32> to vector<32x32xf32>
    %49 = arith.subf %34, %48 : vector<32x32xf32>
    %cst_26 = arith.constant 9.99999974E-6 : f32
    %50 = vector.broadcast %cst_26 : f32 to vector<32x1xf32>
    %51 = arith.addf %47, %50 : vector<32x1xf32>
    %52 = math.rsqrt %51 : vector<32x1xf32>
    %53 = vector.broadcast %52 : vector<32x1xf32> to vector<32x32xf32>
    %54 = arith.mulf %49, %53 : vector<32x32xf32>
    %55 = vector.broadcast %35 : vector<1x32xf32> to vector<32x32xf32>
    %56 = arith.mulf %54, %55 : vector<32x32xf32>
    %57 = vector.broadcast %36 : vector<1x32xf32> to vector<32x32xf32>
    %58 = arith.addf %56, %57 : vector<32x32xf32>
    %c0_27 = arith.constant 0 : index
    %c0_28 = arith.constant 0 : index
    %59 = vector.load %arg9[%c0_27, %c0_28] : memref<32x32xf32, #tpu.memory_space<vmem>>, vector<32x32xf32>
    %cst_29 = arith.constant dense<0.000000e+00> : vector<32x32xf32>
    %60 = tpu.matmul %58, %59, %cst_29 {dimension_numbers = #tpu.dot_dimension_numbers<[1], [0], [0], [1], [0, 0, 1, 1], [], []>} : vector<32x32xf32>, vector<32x32xf32>, vector<32x32xf32> -> vector<32x32xf32>
    %c0_30 = arith.constant 0 : index
    %c0_31 = arith.constant 0 : index
    %61 = vector.load %arg10[%c0_30, %c0_31] : memref<1x32xf32, #tpu.memory_space<vmem>>, vector<1x32xf32>
    %62 = vector.broadcast %61 : vector<1x32xf32> to vector<32x32xf32>
    %63 = arith.addf %60, %62 : vector<32x32xf32>
    %cst_32 = arith.constant dense<0.000000e+00> : vector<16x32xf32>
    %64 = tpu.matmul %18, %63, %cst_32 {dimension_numbers = #tpu.dot_dimension_numbers<[1], [0], [0], [1], [0, 0, 1, 1], [], []>} : vector<16x32xf32>, vector<32x32xf32>, vector<16x32xf32> -> vector<16x32xf32>
    %c0_33 = arith.constant 0 : index
    %c0_34 = arith.constant 0 : index
    %65 = vector.load %arg11[%c0_33, %c0_34] : memref<40x32xf32, #tpu.memory_space<vmem>>, vector<40x32xf32>
    %66 = vector.extract_strided_slice %65 {offsets = [0, 0], sizes = [8, 32], strides = [1, 1]} : vector<40x32xf32> to vector<8x32xf32>
    %cst_35 = arith.constant dense<0.000000e+00> : vector<16x32xf32>
    %67 = tpu.matmul %0, %66, %cst_35 {dimension_numbers = #tpu.dot_dimension_numbers<[1], [0], [0], [1], [0, 0, 1, 1], [], []>} : vector<16x8xf32>, vector<8x32xf32>, vector<16x32xf32> -> vector<16x32xf32>
    %68 = vector.extract_strided_slice %65 {offsets = [8, 0], sizes = [32, 32], strides = [1, 1]} : vector<40x32xf32> to vector<32x32xf32>
    %cst_36 = arith.constant dense<0.000000e+00> : vector<16x32xf32>
    %69 = tpu.matmul %64, %68, %cst_36 {dimension_numbers = #tpu.dot_dimension_numbers<[1], [0], [0], [1], [0, 0, 1, 1], [], []>} : vector<16x32xf32>, vector<32x32xf32>, vector<16x32xf32> -> vector<16x32xf32>
    %70 = arith.addf %67, %69 : vector<16x32xf32>
    %c0_37 = arith.constant 0 : index
    %c0_38 = arith.constant 0 : index
    %71 = vector.load %arg12[%c0_37, %c0_38] : memref<1x32xf32, #tpu.memory_space<vmem>>, vector<1x32xf32>
    %72 = vector.broadcast %71 : vector<1x32xf32> to vector<16x32xf32>
    %73 = arith.addf %70, %72 : vector<16x32xf32>
    %cst_39 = arith.constant 0.000000e+00 : f32
    %74 = vector.broadcast %cst_39 : f32 to vector<16x32xf32>
    %75 = arith.maximumf %73, %74 : vector<16x32xf32>
    %c0_40 = arith.constant 0 : index
    %c0_41 = arith.constant 0 : index
    %76 = vector.load %arg13[%c0_40, %c0_41] : memref<1x32xf32, #tpu.memory_space<vmem>>, vector<1x32xf32>
    %c0_42 = arith.constant 0 : index
    %c0_43 = arith.constant 0 : index
    %77 = vector.load %arg14[%c0_42, %c0_43] : memref<1x32xf32, #tpu.memory_space<vmem>>, vector<1x32xf32>
    %cst_44 = arith.constant dense<0.000000e+00> : vector<16xf32>
    %78 = vector.multi_reduction <add>, %75, %cst_44 [1] : vector<16x32xf32> to vector<16xf32>
    %79 = vector.shape_cast %78 : vector<16xf32> to vector<16x1xf32>
    %cst_45 = arith.constant 3.200000e+01 : f32
    %80 = vector.broadcast %cst_45 : f32 to vector<16x1xf32>
    %81 = arith.divf %79, %80 : vector<16x1xf32>
    %82 = vector.broadcast %81 : vector<16x1xf32> to vector<16x32xf32>
    %83 = arith.subf %75, %82 : vector<16x32xf32>
    %84 = arith.mulf %83, %83 : vector<16x32xf32>
    %cst_46 = arith.constant dense<0.000000e+00> : vector<16xf32>
    %85 = vector.multi_reduction <add>, %84, %cst_46 [1] : vector<16x32xf32> to vector<16xf32>
    %86 = vector.shape_cast %85 : vector<16xf32> to vector<16x1xf32>
    %cst_47 = arith.constant 3.200000e+01 : f32
    %87 = vector.broadcast %cst_47 : f32 to vector<16x1xf32>
    %88 = arith.divf %86, %87 : vector<16x1xf32>
    %89 = vector.broadcast %81 : vector<16x1xf32> to vector<16x32xf32>
    %90 = arith.subf %75, %89 : vector<16x32xf32>
    %cst_48 = arith.constant 9.99999974E-6 : f32
    %91 = vector.broadcast %cst_48 : f32 to vector<16x1xf32>
    %92 = arith.addf %88, %91 : vector<16x1xf32>
    %93 = math.rsqrt %92 : vector<16x1xf32>
    %94 = vector.broadcast %93 : vector<16x1xf32> to vector<16x32xf32>
    %95 = arith.mulf %90, %94 : vector<16x32xf32>
    %96 = vector.broadcast %76 : vector<1x32xf32> to vector<16x32xf32>
    %97 = arith.mulf %95, %96 : vector<16x32xf32>
    %98 = vector.broadcast %77 : vector<1x32xf32> to vector<16x32xf32>
    %99 = arith.addf %97, %98 : vector<16x32xf32>
    %c0_49 = arith.constant 0 : index
    %c0_50 = arith.constant 0 : index
    %100 = vector.load %arg15[%c0_49, %c0_50] : memref<32x32xf32, #tpu.memory_space<vmem>>, vector<32x32xf32>
    %cst_51 = arith.constant dense<0.000000e+00> : vector<16x32xf32>
    %101 = tpu.matmul %99, %100, %cst_51 {dimension_numbers = #tpu.dot_dimension_numbers<[1], [0], [0], [1], [0, 0, 1, 1], [], []>} : vector<16x32xf32>, vector<32x32xf32>, vector<16x32xf32> -> vector<16x32xf32>
    %c0_52 = arith.constant 0 : index
    %c0_53 = arith.constant 0 : index
    %102 = vector.load %arg16[%c0_52, %c0_53] : memref<1x32xf32, #tpu.memory_space<vmem>>, vector<1x32xf32>
    %103 = vector.broadcast %102 : vector<1x32xf32> to vector<16x32xf32>
    %104 = arith.addf %101, %103 : vector<16x32xf32>
    %cst_54 = arith.constant dense<0.000000e+00> : vector<32x32xf32>
    %105 = tpu.matmul %8, %104, %cst_54 {dimension_numbers = #tpu.dot_dimension_numbers<[1], [0], [0], [1], [0, 0, 1, 1], [], []>} : vector<32x16xf32>, vector<16x32xf32>, vector<32x32xf32> -> vector<32x32xf32>
    %cst_55 = arith.constant dense<0.000000e+00> : vector<32x32xf32>
    %106 = tpu.matmul %13, %104, %cst_55 {dimension_numbers = #tpu.dot_dimension_numbers<[1], [0], [0], [1], [0, 0, 1, 1], [], []>} : vector<32x16xf32>, vector<16x32xf32>, vector<32x32xf32> -> vector<32x32xf32>
    %c0_56 = arith.constant 0 : index
    %c0_57 = arith.constant 0 : index
    %107 = vector.load %arg17[%c0_56, %c0_57] : memref<96x32xf32, #tpu.memory_space<vmem>>, vector<96x32xf32>
    %108 = vector.extract_strided_slice %107 {offsets = [0, 0], sizes = [32, 32], strides = [1, 1]} : vector<96x32xf32> to vector<32x32xf32>
    %cst_58 = arith.constant dense<0.000000e+00> : vector<32x32xf32>
    %109 = tpu.matmul %105, %108, %cst_58 {dimension_numbers = #tpu.dot_dimension_numbers<[1], [0], [0], [1], [0, 0, 1, 1], [], []>} : vector<32x32xf32>, vector<32x32xf32>, vector<32x32xf32> -> vector<32x32xf32>
    %110 = vector.extract_strided_slice %107 {offsets = [32, 0], sizes = [32, 32], strides = [1, 1]} : vector<96x32xf32> to vector<32x32xf32>
    %cst_59 = arith.constant dense<0.000000e+00> : vector<32x32xf32>
    %111 = tpu.matmul %106, %110, %cst_59 {dimension_numbers = #tpu.dot_dimension_numbers<[1], [0], [0], [1], [0, 0, 1, 1], [], []>} : vector<32x32xf32>, vector<32x32xf32>, vector<32x32xf32> -> vector<32x32xf32>
    %112 = arith.addf %109, %111 : vector<32x32xf32>
    %113 = vector.extract_strided_slice %107 {offsets = [64, 0], sizes = [32, 32], strides = [1, 1]} : vector<96x32xf32> to vector<32x32xf32>
    %cst_60 = arith.constant dense<0.000000e+00> : vector<32x32xf32>
    %114 = tpu.matmul %63, %113, %cst_60 {dimension_numbers = #tpu.dot_dimension_numbers<[1], [0], [0], [1], [0, 0, 1, 1], [], []>} : vector<32x32xf32>, vector<32x32xf32>, vector<32x32xf32> -> vector<32x32xf32>
    %115 = arith.addf %112, %114 : vector<32x32xf32>
    %c0_61 = arith.constant 0 : index
    %c0_62 = arith.constant 0 : index
    %116 = vector.load %arg18[%c0_61, %c0_62] : memref<1x32xf32, #tpu.memory_space<vmem>>, vector<1x32xf32>
    %117 = vector.broadcast %116 : vector<1x32xf32> to vector<32x32xf32>
    %118 = arith.addf %115, %117 : vector<32x32xf32>
    %cst_63 = arith.constant 0.000000e+00 : f32
    %119 = vector.broadcast %cst_63 : f32 to vector<32x32xf32>
    %120 = arith.maximumf %118, %119 : vector<32x32xf32>
    %c0_64 = arith.constant 0 : index
    %c0_65 = arith.constant 0 : index
    %121 = vector.load %arg19[%c0_64, %c0_65] : memref<1x32xf32, #tpu.memory_space<vmem>>, vector<1x32xf32>
    %c0_66 = arith.constant 0 : index
    %c0_67 = arith.constant 0 : index
    %122 = vector.load %arg20[%c0_66, %c0_67] : memref<1x32xf32, #tpu.memory_space<vmem>>, vector<1x32xf32>
    %cst_68 = arith.constant dense<0.000000e+00> : vector<32xf32>
    %123 = vector.multi_reduction <add>, %120, %cst_68 [1] : vector<32x32xf32> to vector<32xf32>
    %124 = vector.shape_cast %123 : vector<32xf32> to vector<32x1xf32>
    %cst_69 = arith.constant 3.200000e+01 : f32
    %125 = vector.broadcast %cst_69 : f32 to vector<32x1xf32>
    %126 = arith.divf %124, %125 : vector<32x1xf32>
    %127 = vector.broadcast %126 : vector<32x1xf32> to vector<32x32xf32>
    %128 = arith.subf %120, %127 : vector<32x32xf32>
    %129 = arith.mulf %128, %128 : vector<32x32xf32>
    %cst_70 = arith.constant dense<0.000000e+00> : vector<32xf32>
    %130 = vector.multi_reduction <add>, %129, %cst_70 [1] : vector<32x32xf32> to vector<32xf32>
    %131 = vector.shape_cast %130 : vector<32xf32> to vector<32x1xf32>
    %cst_71 = arith.constant 3.200000e+01 : f32
    %132 = vector.broadcast %cst_71 : f32 to vector<32x1xf32>
    %133 = arith.divf %131, %132 : vector<32x1xf32>
    %134 = vector.broadcast %126 : vector<32x1xf32> to vector<32x32xf32>
    %135 = arith.subf %120, %134 : vector<32x32xf32>
    %cst_72 = arith.constant 9.99999974E-6 : f32
    %136 = vector.broadcast %cst_72 : f32 to vector<32x1xf32>
    %137 = arith.addf %133, %136 : vector<32x1xf32>
    %138 = math.rsqrt %137 : vector<32x1xf32>
    %139 = vector.broadcast %138 : vector<32x1xf32> to vector<32x32xf32>
    %140 = arith.mulf %135, %139 : vector<32x32xf32>
    %141 = vector.broadcast %121 : vector<1x32xf32> to vector<32x32xf32>
    %142 = arith.mulf %140, %141 : vector<32x32xf32>
    %143 = vector.broadcast %122 : vector<1x32xf32> to vector<32x32xf32>
    %144 = arith.addf %142, %143 : vector<32x32xf32>
    %c0_73 = arith.constant 0 : index
    %c0_74 = arith.constant 0 : index
    %145 = vector.load %arg21[%c0_73, %c0_74] : memref<32x32xf32, #tpu.memory_space<vmem>>, vector<32x32xf32>
    %cst_75 = arith.constant dense<0.000000e+00> : vector<32x32xf32>
    %146 = tpu.matmul %144, %145, %cst_75 {dimension_numbers = #tpu.dot_dimension_numbers<[1], [0], [0], [1], [0, 0, 1, 1], [], []>} : vector<32x32xf32>, vector<32x32xf32>, vector<32x32xf32> -> vector<32x32xf32>
    %c0_76 = arith.constant 0 : index
    %c0_77 = arith.constant 0 : index
    %147 = vector.load %arg22[%c0_76, %c0_77] : memref<1x32xf32, #tpu.memory_space<vmem>>, vector<1x32xf32>
    %148 = vector.broadcast %147 : vector<1x32xf32> to vector<32x32xf32>
    %149 = arith.addf %146, %148 : vector<32x32xf32>
    %cst_78 = arith.constant dense<0.000000e+00> : vector<16x32xf32>
    %150 = tpu.matmul %18, %149, %cst_78 {dimension_numbers = #tpu.dot_dimension_numbers<[1], [0], [0], [1], [0, 0, 1, 1], [], []>} : vector<16x32xf32>, vector<32x32xf32>, vector<16x32xf32> -> vector<16x32xf32>
    %c0_79 = arith.constant 0 : index
    %c0_80 = arith.constant 0 : index
    %151 = vector.load %arg23[%c0_79, %c0_80] : memref<64x32xf32, #tpu.memory_space<vmem>>, vector<64x32xf32>
    %152 = vector.extract_strided_slice %151 {offsets = [0, 0], sizes = [32, 32], strides = [1, 1]} : vector<64x32xf32> to vector<32x32xf32>
    %cst_81 = arith.constant dense<0.000000e+00> : vector<16x32xf32>
    %153 = tpu.matmul %104, %152, %cst_81 {dimension_numbers = #tpu.dot_dimension_numbers<[1], [0], [0], [1], [0, 0, 1, 1], [], []>} : vector<16x32xf32>, vector<32x32xf32>, vector<16x32xf32> -> vector<16x32xf32>
    %154 = vector.extract_strided_slice %151 {offsets = [32, 0], sizes = [32, 32], strides = [1, 1]} : vector<64x32xf32> to vector<32x32xf32>
    %cst_82 = arith.constant dense<0.000000e+00> : vector<16x32xf32>
    %155 = tpu.matmul %150, %154, %cst_82 {dimension_numbers = #tpu.dot_dimension_numbers<[1], [0], [0], [1], [0, 0, 1, 1], [], []>} : vector<16x32xf32>, vector<32x32xf32>, vector<16x32xf32> -> vector<16x32xf32>
    %156 = arith.addf %153, %155 : vector<16x32xf32>
    %c0_83 = arith.constant 0 : index
    %c0_84 = arith.constant 0 : index
    %157 = vector.load %arg24[%c0_83, %c0_84] : memref<1x32xf32, #tpu.memory_space<vmem>>, vector<1x32xf32>
    %158 = vector.broadcast %157 : vector<1x32xf32> to vector<16x32xf32>
    %159 = arith.addf %156, %158 : vector<16x32xf32>
    %cst_85 = arith.constant 0.000000e+00 : f32
    %160 = vector.broadcast %cst_85 : f32 to vector<16x32xf32>
    %161 = arith.maximumf %159, %160 : vector<16x32xf32>
    %c0_86 = arith.constant 0 : index
    %c0_87 = arith.constant 0 : index
    %162 = vector.load %arg25[%c0_86, %c0_87] : memref<1x32xf32, #tpu.memory_space<vmem>>, vector<1x32xf32>
    %c0_88 = arith.constant 0 : index
    %c0_89 = arith.constant 0 : index
    %163 = vector.load %arg26[%c0_88, %c0_89] : memref<1x32xf32, #tpu.memory_space<vmem>>, vector<1x32xf32>
    %cst_90 = arith.constant dense<0.000000e+00> : vector<16xf32>
    %164 = vector.multi_reduction <add>, %161, %cst_90 [1] : vector<16x32xf32> to vector<16xf32>
    %165 = vector.shape_cast %164 : vector<16xf32> to vector<16x1xf32>
    %cst_91 = arith.constant 3.200000e+01 : f32
    %166 = vector.broadcast %cst_91 : f32 to vector<16x1xf32>
    %167 = arith.divf %165, %166 : vector<16x1xf32>
    %168 = vector.broadcast %167 : vector<16x1xf32> to vector<16x32xf32>
    %169 = arith.subf %161, %168 : vector<16x32xf32>
    %170 = arith.mulf %169, %169 : vector<16x32xf32>
    %cst_92 = arith.constant dense<0.000000e+00> : vector<16xf32>
    %171 = vector.multi_reduction <add>, %170, %cst_92 [1] : vector<16x32xf32> to vector<16xf32>
    %172 = vector.shape_cast %171 : vector<16xf32> to vector<16x1xf32>
    %cst_93 = arith.constant 3.200000e+01 : f32
    %173 = vector.broadcast %cst_93 : f32 to vector<16x1xf32>
    %174 = arith.divf %172, %173 : vector<16x1xf32>
    %175 = vector.broadcast %167 : vector<16x1xf32> to vector<16x32xf32>
    %176 = arith.subf %161, %175 : vector<16x32xf32>
    %cst_94 = arith.constant 9.99999974E-6 : f32
    %177 = vector.broadcast %cst_94 : f32 to vector<16x1xf32>
    %178 = arith.addf %174, %177 : vector<16x1xf32>
    %179 = math.rsqrt %178 : vector<16x1xf32>
    %180 = vector.broadcast %179 : vector<16x1xf32> to vector<16x32xf32>
    %181 = arith.mulf %176, %180 : vector<16x32xf32>
    %182 = vector.broadcast %162 : vector<1x32xf32> to vector<16x32xf32>
    %183 = arith.mulf %181, %182 : vector<16x32xf32>
    %184 = vector.broadcast %163 : vector<1x32xf32> to vector<16x32xf32>
    %185 = arith.addf %183, %184 : vector<16x32xf32>
    %c0_95 = arith.constant 0 : index
    %c0_96 = arith.constant 0 : index
    %186 = vector.load %arg27[%c0_95, %c0_96] : memref<32x32xf32, #tpu.memory_space<vmem>>, vector<32x32xf32>
    %cst_97 = arith.constant dense<0.000000e+00> : vector<16x32xf32>
    %187 = tpu.matmul %185, %186, %cst_97 {dimension_numbers = #tpu.dot_dimension_numbers<[1], [0], [0], [1], [0, 0, 1, 1], [], []>} : vector<16x32xf32>, vector<32x32xf32>, vector<16x32xf32> -> vector<16x32xf32>
    %c0_98 = arith.constant 0 : index
    %c0_99 = arith.constant 0 : index
    %188 = vector.load %arg28[%c0_98, %c0_99] : memref<1x32xf32, #tpu.memory_space<vmem>>, vector<1x32xf32>
    %189 = vector.broadcast %188 : vector<1x32xf32> to vector<16x32xf32>
    %190 = arith.addf %187, %189 : vector<16x32xf32>
    %191 = arith.addf %190, %104 : vector<16x32xf32>
    %192 = arith.addf %149, %63 : vector<32x32xf32>
    %193 = arith.addf %104, %191 : vector<16x32xf32>
    %194 = arith.addf %63, %192 : vector<32x32xf32>
    %cst_100 = arith.constant dense<0.000000e+00> : vector<32x32xf32>
    %195 = tpu.matmul %8, %193, %cst_100 {dimension_numbers = #tpu.dot_dimension_numbers<[1], [0], [0], [1], [0, 0, 1, 1], [], []>} : vector<32x16xf32>, vector<16x32xf32>, vector<32x32xf32> -> vector<32x32xf32>
    %cst_101 = arith.constant dense<0.000000e+00> : vector<32x32xf32>
    %196 = tpu.matmul %13, %193, %cst_101 {dimension_numbers = #tpu.dot_dimension_numbers<[1], [0], [0], [1], [0, 0, 1, 1], [], []>} : vector<32x16xf32>, vector<16x32xf32>, vector<32x32xf32> -> vector<32x32xf32>
    %c0_102 = arith.constant 0 : index
    %c0_103 = arith.constant 0 : index
    %197 = vector.load %arg29[%c0_102, %c0_103] : memref<96x32xf32, #tpu.memory_space<vmem>>, vector<96x32xf32>
    %198 = vector.extract_strided_slice %197 {offsets = [0, 0], sizes = [32, 32], strides = [1, 1]} : vector<96x32xf32> to vector<32x32xf32>
    %cst_104 = arith.constant dense<0.000000e+00> : vector<32x32xf32>
    %199 = tpu.matmul %195, %198, %cst_104 {dimension_numbers = #tpu.dot_dimension_numbers<[1], [0], [0], [1], [0, 0, 1, 1], [], []>} : vector<32x32xf32>, vector<32x32xf32>, vector<32x32xf32> -> vector<32x32xf32>
    %200 = vector.extract_strided_slice %197 {offsets = [32, 0], sizes = [32, 32], strides = [1, 1]} : vector<96x32xf32> to vector<32x32xf32>
    %cst_105 = arith.constant dense<0.000000e+00> : vector<32x32xf32>
    %201 = tpu.matmul %196, %200, %cst_105 {dimension_numbers = #tpu.dot_dimension_numbers<[1], [0], [0], [1], [0, 0, 1, 1], [], []>} : vector<32x32xf32>, vector<32x32xf32>, vector<32x32xf32> -> vector<32x32xf32>
    %202 = arith.addf %199, %201 : vector<32x32xf32>
    %203 = vector.extract_strided_slice %197 {offsets = [64, 0], sizes = [32, 32], strides = [1, 1]} : vector<96x32xf32> to vector<32x32xf32>
    %cst_106 = arith.constant dense<0.000000e+00> : vector<32x32xf32>
    %204 = tpu.matmul %194, %203, %cst_106 {dimension_numbers = #tpu.dot_dimension_numbers<[1], [0], [0], [1], [0, 0, 1, 1], [], []>} : vector<32x32xf32>, vector<32x32xf32>, vector<32x32xf32> -> vector<32x32xf32>
    %205 = arith.addf %202, %204 : vector<32x32xf32>
    %c0_107 = arith.constant 0 : index
    %c0_108 = arith.constant 0 : index
    %206 = vector.load %arg30[%c0_107, %c0_108] : memref<1x32xf32, #tpu.memory_space<vmem>>, vector<1x32xf32>
    %207 = vector.broadcast %206 : vector<1x32xf32> to vector<32x32xf32>
    %208 = arith.addf %205, %207 : vector<32x32xf32>
    %cst_109 = arith.constant 0.000000e+00 : f32
    %209 = vector.broadcast %cst_109 : f32 to vector<32x32xf32>
    %210 = arith.maximumf %208, %209 : vector<32x32xf32>
    %c0_110 = arith.constant 0 : index
    %c0_111 = arith.constant 0 : index
    %211 = vector.load %arg31[%c0_110, %c0_111] : memref<1x32xf32, #tpu.memory_space<vmem>>, vector<1x32xf32>
    %c0_112 = arith.constant 0 : index
    %c0_113 = arith.constant 0 : index
    %212 = vector.load %arg32[%c0_112, %c0_113] : memref<1x32xf32, #tpu.memory_space<vmem>>, vector<1x32xf32>
    %cst_114 = arith.constant dense<0.000000e+00> : vector<32xf32>
    %213 = vector.multi_reduction <add>, %210, %cst_114 [1] : vector<32x32xf32> to vector<32xf32>
    %214 = vector.shape_cast %213 : vector<32xf32> to vector<32x1xf32>
    %cst_115 = arith.constant 3.200000e+01 : f32
    %215 = vector.broadcast %cst_115 : f32 to vector<32x1xf32>
    %216 = arith.divf %214, %215 : vector<32x1xf32>
    %217 = vector.broadcast %216 : vector<32x1xf32> to vector<32x32xf32>
    %218 = arith.subf %210, %217 : vector<32x32xf32>
    %219 = arith.mulf %218, %218 : vector<32x32xf32>
    %cst_116 = arith.constant dense<0.000000e+00> : vector<32xf32>
    %220 = vector.multi_reduction <add>, %219, %cst_116 [1] : vector<32x32xf32> to vector<32xf32>
    %221 = vector.shape_cast %220 : vector<32xf32> to vector<32x1xf32>
    %cst_117 = arith.constant 3.200000e+01 : f32
    %222 = vector.broadcast %cst_117 : f32 to vector<32x1xf32>
    %223 = arith.divf %221, %222 : vector<32x1xf32>
    %224 = vector.broadcast %216 : vector<32x1xf32> to vector<32x32xf32>
    %225 = arith.subf %210, %224 : vector<32x32xf32>
    %cst_118 = arith.constant 9.99999974E-6 : f32
    %226 = vector.broadcast %cst_118 : f32 to vector<32x1xf32>
    %227 = arith.addf %223, %226 : vector<32x1xf32>
    %228 = math.rsqrt %227 : vector<32x1xf32>
    %229 = vector.broadcast %228 : vector<32x1xf32> to vector<32x32xf32>
    %230 = arith.mulf %225, %229 : vector<32x32xf32>
    %231 = vector.broadcast %211 : vector<1x32xf32> to vector<32x32xf32>
    %232 = arith.mulf %230, %231 : vector<32x32xf32>
    %233 = vector.broadcast %212 : vector<1x32xf32> to vector<32x32xf32>
    %234 = arith.addf %232, %233 : vector<32x32xf32>
    %c0_119 = arith.constant 0 : index
    %c0_120 = arith.constant 0 : index
    %235 = vector.load %arg33[%c0_119, %c0_120] : memref<32x1xf32, #tpu.memory_space<vmem>>, vector<32x1xf32>
    %cst_121 = arith.constant dense<0.000000e+00> : vector<32x1xf32>
    %236 = tpu.matmul %234, %235, %cst_121 {dimension_numbers = #tpu.dot_dimension_numbers<[1], [0], [0], [1], [0, 0, 1, 1], [], []>} : vector<32x32xf32>, vector<32x1xf32>, vector<32x1xf32> -> vector<32x1xf32>
    %c0_122 = arith.constant 0 : index
    %c0_123 = arith.constant 0 : index
    %237 = vector.load %arg34[%c0_122, %c0_123] : memref<1x1xf32, #tpu.memory_space<vmem>>, vector<1x1xf32>
    %238 = vector.broadcast %237 : vector<1x1xf32> to vector<32x1xf32>
    %239 = arith.addf %236, %238 : vector<32x1xf32>
    %cst_124 = arith.constant dense<0.000000e+00> : vector<16x1xf32>
    %240 = tpu.matmul %18, %239, %cst_124 {dimension_numbers = #tpu.dot_dimension_numbers<[1], [0], [0], [1], [0, 0, 1, 1], [], []>} : vector<16x32xf32>, vector<32x1xf32>, vector<16x1xf32> -> vector<16x1xf32>
    %c0_125 = arith.constant 0 : index
    %c0_126 = arith.constant 0 : index
    %241 = vector.load %arg35[%c0_125, %c0_126] : memref<33x32xf32, #tpu.memory_space<vmem>>, vector<33x32xf32>
    %242 = vector.extract_strided_slice %241 {offsets = [0, 0], sizes = [32, 32], strides = [1, 1]} : vector<33x32xf32> to vector<32x32xf32>
    %cst_127 = arith.constant dense<0.000000e+00> : vector<16x32xf32>
    %243 = tpu.matmul %193, %242, %cst_127 {dimension_numbers = #tpu.dot_dimension_numbers<[1], [0], [0], [1], [0, 0, 1, 1], [], []>} : vector<16x32xf32>, vector<32x32xf32>, vector<16x32xf32> -> vector<16x32xf32>
    %244 = vector.extract_strided_slice %241 {offsets = [32, 0], sizes = [1, 32], strides = [1, 1]} : vector<33x32xf32> to vector<1x32xf32>
    %245 = vector.broadcast %240 : vector<16x1xf32> to vector<16x32xf32>
    %246 = vector.broadcast %244 : vector<1x32xf32> to vector<16x32xf32>
    %247 = arith.mulf %245, %246 : vector<16x32xf32>
    %248 = arith.addf %243, %247 : vector<16x32xf32>
    %c0_128 = arith.constant 0 : index
    %c0_129 = arith.constant 0 : index
    %249 = vector.load %arg36[%c0_128, %c0_129] : memref<1x32xf32, #tpu.memory_space<vmem>>, vector<1x32xf32>
    %250 = vector.broadcast %249 : vector<1x32xf32> to vector<16x32xf32>
    %251 = arith.addf %248, %250 : vector<16x32xf32>
    %cst_130 = arith.constant 0.000000e+00 : f32
    %252 = vector.broadcast %cst_130 : f32 to vector<16x32xf32>
    %253 = arith.maximumf %251, %252 : vector<16x32xf32>
    %c0_131 = arith.constant 0 : index
    %c0_132 = arith.constant 0 : index
    %254 = vector.load %arg37[%c0_131, %c0_132] : memref<1x32xf32, #tpu.memory_space<vmem>>, vector<1x32xf32>
    %c0_133 = arith.constant 0 : index
    %c0_134 = arith.constant 0 : index
    %255 = vector.load %arg38[%c0_133, %c0_134] : memref<1x32xf32, #tpu.memory_space<vmem>>, vector<1x32xf32>
    %cst_135 = arith.constant dense<0.000000e+00> : vector<16xf32>
    %256 = vector.multi_reduction <add>, %253, %cst_135 [1] : vector<16x32xf32> to vector<16xf32>
    %257 = vector.shape_cast %256 : vector<16xf32> to vector<16x1xf32>
    %cst_136 = arith.constant 3.200000e+01 : f32
    %258 = vector.broadcast %cst_136 : f32 to vector<16x1xf32>
    %259 = arith.divf %257, %258 : vector<16x1xf32>
    %260 = vector.broadcast %259 : vector<16x1xf32> to vector<16x32xf32>
    %261 = arith.subf %253, %260 : vector<16x32xf32>
    %262 = arith.mulf %261, %261 : vector<16x32xf32>
    %cst_137 = arith.constant dense<0.000000e+00> : vector<16xf32>
    %263 = vector.multi_reduction <add>, %262, %cst_137 [1] : vector<16x32xf32> to vector<16xf32>
    %264 = vector.shape_cast %263 : vector<16xf32> to vector<16x1xf32>
    %cst_138 = arith.constant 3.200000e+01 : f32
    %265 = vector.broadcast %cst_138 : f32 to vector<16x1xf32>
    %266 = arith.divf %264, %265 : vector<16x1xf32>
    %267 = vector.broadcast %259 : vector<16x1xf32> to vector<16x32xf32>
    %268 = arith.subf %253, %267 : vector<16x32xf32>
    %cst_139 = arith.constant 9.99999974E-6 : f32
    %269 = vector.broadcast %cst_139 : f32 to vector<16x1xf32>
    %270 = arith.addf %266, %269 : vector<16x1xf32>
    %271 = math.rsqrt %270 : vector<16x1xf32>
    %272 = vector.broadcast %271 : vector<16x1xf32> to vector<16x32xf32>
    %273 = arith.mulf %268, %272 : vector<16x32xf32>
    %274 = vector.broadcast %254 : vector<1x32xf32> to vector<16x32xf32>
    %275 = arith.mulf %273, %274 : vector<16x32xf32>
    %276 = vector.broadcast %255 : vector<1x32xf32> to vector<16x32xf32>
    %277 = arith.addf %275, %276 : vector<16x32xf32>
    %c0_140 = arith.constant 0 : index
    %c0_141 = arith.constant 0 : index
    %278 = vector.load %arg39[%c0_140, %c0_141] : memref<32x16xf32, #tpu.memory_space<vmem>>, vector<32x16xf32>
    %cst_142 = arith.constant dense<0.000000e+00> : vector<16x16xf32>
    %279 = tpu.matmul %277, %278, %cst_142 {dimension_numbers = #tpu.dot_dimension_numbers<[1], [0], [0], [1], [0, 0, 1, 1], [], []>} : vector<16x32xf32>, vector<32x16xf32>, vector<16x16xf32> -> vector<16x16xf32>
    %c0_143 = arith.constant 0 : index
    %c0_144 = arith.constant 0 : index
    %280 = vector.load %arg40[%c0_143, %c0_144] : memref<1x16xf32, #tpu.memory_space<vmem>>, vector<1x16xf32>
    %281 = vector.broadcast %280 : vector<1x16xf32> to vector<16x16xf32>
    %282 = arith.addf %279, %281 : vector<16x16xf32>
    %c0_145 = arith.constant 0 : index
    %c0_146 = arith.constant 0 : index
    %283 = vector.load %arg41[%c0_145, %c0_146] : memref<16x16xf32, #tpu.memory_space<vmem>>, vector<16x16xf32>
    tpu.vector_store %arg41[%c0_145, %c0_146], %282 {strides = array<i32>} : memref<16x16xf32, #tpu.memory_space<vmem>>, vector<16x16xf32>,
    %c0_147 = arith.constant 0 : index
    %c0_148 = arith.constant 0 : index
    %284 = vector.load %arg42[%c0_147, %c0_148] : memref<32x1xf32, #tpu.memory_space<vmem>>, vector<32x1xf32>
    tpu.vector_store %arg42[%c0_147, %c0_148], %239 {strides = array<i32>} : memref<32x1xf32, #tpu.memory_space<vmem>>, vector<32x1xf32>,
    return
  }
}

</mosaic_0001>

<bundles_post_ra>
// kernel: encoder_forward.1
= control target key start
LH: loop header
LB: loop body
LE: loop exit
PB: predicated region body
PF: predicated region fallthrough
CT: control target
= control target key end

     0   :  { %s4447_s6 = smov 1   ;;  %s4448_s10 = smov 2   ;;  %s5090_s0 = inlined_call_operand.smem [shape: u32[43], index: -1, kind: input, shape index: {}] }
   0x1   :  { %s4502_s5 = sld [smem:[%s5090_s0]]   ;;  %s4449_s14 = smov 3  }
   0x2   :  { %s4507_s9 = sld [smem:[%s5090_s0 + %s4447_s6]]   ;;  %s4450_s18 = smov 4  }
   0x3   :  { %s4512_s13 = sld [smem:[%s5090_s0 + %s4448_s10]]   ;;  %s4451_s22 = smov 5  }
   0x4   :  { %s4517_s17 = sld [smem:[%s5090_s0 + %s4449_s14]]   ;;  %s4452_s26 = smov 6  }
   0x5   :  { %s4522_s21 = sld [smem:[%s5090_s0 + %s4450_s18]]   ;;  %s4453_s30 = smov 7  }
   0x6   :  { %s4527_s25 = sld [smem:[%s5090_s0 + %s4451_s22]]   ;;  %s4454_s4 = smov 8  }
   0x7   :  { %s4532_s29 = sld [smem:[%s5090_s0 + %s4452_s26]]   ;;  %s4455_s10 = smov 9  }
   0x8   :  { %s4537_s3 = sld [smem:[%s5090_s0 + %s4453_s30]]   ;;  %s4456_s15 = smov 10  }
   0x9   :  { %s4542_s8 = sld [smem:[%s5090_s0 + %s4454_s4]]   ;;  %s4457_s20 = smov 11  }
   0xa   :  { %s4547_s14 = sld [smem:[%s5090_s0 + %s4455_s10]]   ;;  %s4458_s26 = smov 12  }
   0xb   :  { %s4552_s19 = sld [smem:[%s5090_s0 + %s4456_s15]]   ;;  %s4459_s1 = smov 13  }
   0xc   :  { %s4557_s24 = sld [smem:[%s5090_s0 + %s4457_s20]]   ;;  %s4460_s7 = smov 14  }
   0xd   :  { %s4562_s30 = sld [smem:[%s5090_s0 + %s4458_s26]]   ;;  %s4461_s15 = smov 15  }
   0xe   :  { %s4567_s6 = sld [smem:[%s5090_s0 + %s4459_s1]]   ;;  %s4462_s22 = smov 16  }
   0xf   :  { %s4572_s12 = sld [smem:[%s5090_s0 + %s4460_s7]]   ;;  %s4463_s28 = smov 17  }
  0x10   :  { %s4577_s20 = sld [smem:[%s5090_s0 + %s4461_s15]]   ;;  %s4464_s7 = smov 18  }
  0x11   :  { %s4582_s27 = sld [smem:[%s5090_s0 + %s4462_s22]]   ;;  %s4465_s15 = smov 19  }
  0x12   :  { %s4587_s4 = sld [smem:[%s5090_s0 + %s4463_s28]]   ;;  %s4466_s22 = smov 20  }
  0x13   :  { %s4467_s28 = smov 21   ;;  %s4481_s16 = smov 35  }
  0x14   :  { %5099 = sst [smem:[#allocation6_spill]] %s4567_s6  ;;  %s4482_s23 = smov 36  }
  0x15   :  { %5100 = sst [smem:[#allocation7_spill]] %s4572_s12  ;;  %s4483_s1 = smov 37  }
  0x16   :  { %5101 = sst [smem:[#allocation8_spill]] %s4577_s20  ;;  %s4484_s10 = smov 38  }
  0x17   :  { %5102 = sst [smem:[#allocation9_spill]] %s4582_s27 }
  0x18   :  { %5103 = sst [smem:[#allocation10_spill]] %s4587_s4 }
  0x19   :  { %s4592_s12 = sld [smem:[%s5090_s0 + %s4464_s7]]   ;;  %s4468_s7 = smov 22  }
  0x1a   :  { %s4597_s6 = sld [smem:[%s5090_s0 + %s4465_s15]]   ;;  %s4469_s15 = smov 23  }
  0x1b   :  { %s4602_s27 = sld [smem:[%s5090_s0 + %s4466_s22]]   ;;  %s4470_s22 = smov 24  }
  0x1c   :  { %s4607_s4 = sld [smem:[%s5090_s0 + %s4467_s28]]   ;;  %s4471_s28 = smov 25  }
  0x1d   :  { %s4690_s20 = sld [smem:[%s5090_s0 + %s4484_s10]]   ;;  %s4488_s10 = smov 42  }
  0x1f   :  { %5104 = sst [smem:[#allocation11_spill]] %s4592_s12 }
  0x20   :  { %5105 = sst [smem:[#allocation12_spill]] %s4597_s6 }
  0x21   :  { %5106 = sst [smem:[#allocation13_spill]] %s4602_s27 }
  0x22   :  { %5107 = sst [smem:[#allocation14_spill]] %s4607_s4 }
  0x23   :  { %s4612_s12 = sld [smem:[%s5090_s0 + %s4468_s7]]   ;;  %s4472_s7 = smov 26  }
  0x24   :  { %s4617_s6 = sld [smem:[%s5090_s0 + %s4469_s15]]   ;;  %s4473_s15 = smov 27  }
  0x25   :  { %s4622_s27 = sld [smem:[%s5090_s0 + %s4470_s22]]   ;;  %s4474_s22 = smov 28  }
  0x26   :  { %s4627_s4 = sld [smem:[%s5090_s0 + %s4471_s28]]   ;;  %s4475_s28 = smov 29  }
  0x27   :  { %5122 = sst [smem:[#allocation29_spill]] %s4690_s20 }
  0x29   :  { %5108 = sst [smem:[#allocation15_spill]] %s4612_s12 }
  0x2a   :  { %5109 = sst [smem:[#allocation16_spill]] %s4617_s6 }
  0x2b   :  { %5110 = sst [smem:[#allocation17_spill]] %s4622_s27 }
  0x2c   :  { %5111 = sst [smem:[#allocation18_spill]] %s4627_s4 }
  0x2d   :  { %s4632_s12 = sld [smem:[%s5090_s0 + %s4472_s7]]   ;;  %s4476_s7 = smov 30  }
  0x2e   :  { %s4637_s6 = sld [smem:[%s5090_s0 + %s4473_s15]]   ;;  %s4477_s15 = smov 31  }
  0x2f   :  { %s4642_s27 = sld [smem:[%s5090_s0 + %s4474_s22]]   ;;  %s4478_s22 = smov 32  }
  0x30   :  { %s4647_s4 = sld [smem:[%s5090_s0 + %s4475_s28]]   ;;  %s4479_s28 = smov 33  }
  0x33   :  { %5112 = sst [smem:[#allocation19_spill]] %s4632_s12 }
  0x34   :  { %5113 = sst [smem:[#allocation20_spill]] %s4637_s6 }
  0x35   :  { %5114 = sst [smem:[#allocation21_spill]] %s4642_s27 }
  0x36   :  { %5115 = sst [smem:[#allocation22_spill]] %s4647_s4 }
  0x37   :  { %s4652_s12 = sld [smem:[%s5090_s0 + %s4476_s7]]   ;;  %s4480_s7 = smov 34  }
  0x38   :  { %s4657_s6 = sld [smem:[%s5090_s0 + %s4477_s15]]  }
  0x39   :  { %s4662_s27 = sld [smem:[%s5090_s0 + %s4478_s22]]  }
  0x3a   :  { %s4667_s4 = sld [smem:[%s5090_s0 + %s4479_s28]]  }
  0x3d   :  { %5116 = sst [smem:[#allocation23_spill]] %s4652_s12 }
  0x3e   :  { %5117 = sst [smem:[#allocation24_spill]] %s4657_s6 }
  0x3f   :  { %5118 = sst [smem:[#allocation25_spill]] %s4662_s27 }
  0x40   :  { %5119 = sst [smem:[#allocation26_spill]] %s4667_s4 }
  0x41   :  { %s3483_s12 = sld [smem:[%s5090_s0 + %s4480_s7]]  }
  0x42   :  { %s4675_s6 = sld [smem:[%s5090_s0 + %s4481_s16]]   ;;  %s4485_s16 = smov 39  }
  0x43   :  { %s4680_s27 = sld [smem:[%s5090_s0 + %s4482_s23]]   ;;  %s4486_s23 = smov 40  }
  0x44   :  { %s4685_s4 = sld [smem:[%s5090_s0 + %s4483_s1]]   ;;  %s4487_s1 = smov 41  }
  0x45   :  { %s4705_s7 = sld [smem:[%s5090_s0 + %s4487_s1]]  }
  0x47   :  { %v91_v0 = vstv %s3483_s12 }
  0x48   :  { %5120 = sst [smem:[#allocation27_spill]] %s4675_s6  ;;  %92 = vst [vmem:[#allocation2] sm:$0x1] %v91_v0 }
  0x49   :  { %5121 = sst [smem:[#allocation28_spill]] %s4680_s27 }
  0x4a   :  { %s4695_s6 = sld [smem:[%s5090_s0 + %s4485_s16]]  }
  0x4b   :  { %s4700_s27 = sld [smem:[%s5090_s0 + %s4486_s23]]  }
  0x4c   :  { %s4710_s16 = sld [smem:[%s5090_s0 + %s4488_s10]]  }
  0x4d   :  { %v217_v1 = vld [vmem:[%s4507_s9 + $0x10] sm:$0xff]  ;;  %v215_v2 = vld [vmem:[%s4507_s9] sm:$0xff]  ;;  %v4489_v3 = vmov 0   ;;  %v218_v4 = vld [vmem:[%s4507_s9 + $0x18] sm:$0xff] }
  0x4e   :  { %4386 = vset.pattern.permute.xlu1 %v4489_v3  ;;  %4385 = vset.pattern.permute.xlu0 %v4489_v3  ;;  %v4716_v5 = vld [vmem:[%s4517_s17] sm:$0xff]  ;;  %v216_v6 = vld [vmem:[%s4507_s9 + $0x8] sm:$0xff] }
  0x4f   :  { %226 = vperm.xlu1 %4386, %v217_v1   ;;  %220 = vperm.xlu0 %4385, %v215_v2   ;;  %v4720_v7 = vld [vmem:[%s4517_s17 + $0x8] sm:$0xff] }
  0x50   :  { %93 = vsyncpa [#allocation4], 0  ;;  %v4134_v8 = vpack.c.bf16 %v4720_v7, %v4716_v5  ;;  %v188_v9 = vld [vmem:[%s4502_s5 + $0x8] sm:$0xff]  ;;  %v187_v10 = vld [vmem:[%s4502_s5] sm:$0xff]  ;;  %v182_v14 = vlaneseq  ;;  %vm254_vm0 = vcmask 130048   ;;  %v4490_v18 = vmov 0.0  }
  0x51   :  { %v190_v11 = vld [vmem:[%s4502_s5 + $0x18] sm:$0xff]  ;;  %v189_v12 = vld [vmem:[%s4502_s5 + $0x10] sm:$0xff]  ;;  %v450_v13 = vld [vmem:[%s4527_s25 + $0x8] sm:$0xff]  ;;  %vm452_vm9 = vcmask 64512   ;;  %vm660_vm10 = vcmask 1043456   ;;  %vm647_vm11 = vcmask 31744  }
  0x52   :  { %4139 = vmatprep.subr.bf16.mxu1 %v4134_v8  ;;  %4135 = vmatprep.subr.bf16.mxu0 %v4134_v8  ;;  %v183_v15 = vand.u32 127, %v182_v14  ;;  %v449_v33 = vld [vmem:[%s4527_s25] sm:$0xff]  ;;  %v451_v36 = vld [vmem:[%s4527_s25 + $0x10] sm:$0xf]  ;;  %v179_v44 = vld [vmem:[%s4522_s21 + $0x8] sm:$0xff]  ;;  %vm770_vm12 = vcmask 261120  }
  0x53   :  { %229 = vperm.xlu1 %4386, %v218_v4   ;;  %223 = vperm.xlu0 %4385, %v216_v6   ;;  %v178_v43 = vld [vmem:[%s4522_s21] sm:$0xff]  ;;  %v180_v45 = vld [vmem:[%s4522_s21 + $0x10] sm:$0xff]  ;;  %v181_v46 = vld [vmem:[%s4522_s21 + $0x18] sm:$0xff]  ;;  %s5123_s0 = sld [smem:[#allocation8_spill]]  ;;  %s5124_s5 = sld [smem:[#allocation6_spill]]  ;;  %vm3425_vm15 = vcmask 7168  }
  0x54   :  { %4141 = vmatpush3.bf16.msra.mxu1 %v4134_v8  ;;  %4137 = vmatpush3.bf16.msra.mxu0 %v4134_v8  ;;  %v3524_v47 = vld [vmem:[%s4532_s29] ss:$0 sm:$0xff]  ;;  %s5125_s9 = sld [smem:[#allocation7_spill]]  ;;  %s5127_s17 = sld [smem:[#allocation10_spill]] }
  0x55   :  { %3829 = vmatprep.subr.mxu0 %v450_v13  ;;  %s5128_s21 = sld [smem:[#allocation11_spill]]  ;;  %s5129_s25 = sld [smem:[#allocation14_spill]] }
  0x56   :  { %s5130_s29 = sld [smem:[#allocation12_spill]]  ;;  %s5137_s12 = sld [smem:[#allocation19_spill]] }
  0x57   :  { %195 = vperm.xlu1 %4386, %v188_v9   ;;  %192 = vperm.xlu0 %4385, %v187_v10   ;;  %s5138_s20 = sld [smem:[#allocation21_spill]]  ;;  %s5139_s15 = sld [smem:[#allocation22_spill]] }
  0x58   :  { %s5140_s18 = sld [smem:[#allocation23_spill]]  ;;  %s5141_s23 = sld [smem:[#allocation26_spill]] }
  0x59   :  { %s5142_s22 = sld [smem:[#allocation24_spill]]  ;;  %s5143_s26 = sld [smem:[#allocation25_spill]] }
  0x5a   :  { %s5144_s1 = sld [smem:[#allocation27_spill]]  ;;  %s5145_s28 = sld [smem:[#allocation28_spill]] }
  0x5b   :  { %201 = vperm.xlu1 %4386, %v190_v11   ;;  %198 = vperm.xlu0 %4385, %v189_v12   ;;  %s5146_s2 = sld [smem:[#allocation29_spill]] }
  0xce   :  { %v227_v16 = vpop.permute.xlu1 %226  ;;  %v221_v17 = vpop.permute.xlu0 %220 }
  0xcf   :  { %vm231_vm1 = vcmp.eq.s32.totalorder %v221_v17, %v183_v15  ;;  %vm233_vm2 = vcmp.eq.s32.totalorder %v227_v16, %v183_v15 }
  0xd0   :  { %v4731_v19 = vsel %vm231_vm1, 1.0, %v4490_v18  ;;  %v4736_v22 = vsel %vm233_vm2, 1.0, %v4490_v18 }
  0xd1   :  { %3823 = vmatprep.mubr.msk.f32.mxu1 %vm254_vm0, %v4731_v19 }
  0xd2   :  { %v230_v20 = vpop.permute.xlu1 %229  ;;  %v224_v21 = vpop.permute.xlu0 %223 }
  0xd3   :  { %vm232_vm3 = vcmp.eq.s32.totalorder %v224_v21, %v183_v15  ;;  %vm234_vm4 = vcmp.eq.s32.totalorder %v230_v20, %v183_v15 }
  0xd4   :  { %v4739_v23 = vsel %vm232_vm3, 1.0, %v4490_v18  ;;  %v4746_v26 = vsel %vm234_vm4, 1.0, %v4490_v18 }
  0xd5   :  { %3824 = vmatmul.mubr.msk.f32.vlgmr.msra.gmra.mrb[0].mxu1 %vm254_vm0, %v4739_v23 }
  0xd6   :  { %v196_v24 = vpop.permute.xlu1 %195  ;;  %v193_v25 = vpop.permute.xlu0 %192  ;;  %3826 = vmatprep.mubr.msk.f32.mxu1 %vm254_vm0, %v4736_v22 }
  0xd7   :  { %vm204_vm5 = vcmp.eq.s32.totalorder %v196_v24, %v183_v15  ;;  %vm203_vm6 = vcmp.eq.s32.totalorder %v193_v25, %v183_v15 }
  0xd8   :  { %v4749_v27 = vsel %vm204_vm5, 1.0, %v4490_v18  ;;  %v4752_v28 = vsel %vm203_vm6, 1.0, %v4490_v18 }
  0xd9   :  { %3813 = vmatprep.mubr.msk.f32.mxu0 %vm254_vm0, %v4752_v28  ;;  %3827 = vmatmul.mubr.msk.f32.gmra.mrb[2].mxu1 %vm254_vm0, %v4746_v26 }
  0xda   :  { %v202_v29 = vpop.permute.xlu1 %201  ;;  %v199_v30 = vpop.permute.xlu0 %198  ;;  %3814 = vmatmul.mubr.msk.f32.vlgmr.msra.gmra.mrb[0].mxu0 %vm254_vm0, %v4749_v27 }
  0xdb   :  { %vm206_vm7 = vcmp.eq.s32.totalorder %v202_v29, %v183_v15  ;;  %vm205_vm8 = vcmp.eq.s32.totalorder %v199_v30, %v183_v15  ;;  %3830 = vmatpush3.msra.mxu0 %v450_v13  ;;  %v844_v30 = vld [vmem:[%s4547_s14] sm:$0xff] }
  0xdc   :  { %v4761_v31 = vsel %vm206_vm7, 1.0, %v4490_v18  ;;  %v4764_v32 = vsel %vm205_vm8, 1.0, %v4490_v18  ;;  %3837 = vmatprep.subr.mxu0 %v449_v33 }
  0xdd   :  { %3816 = vmatprep.mubr.msk.f32.mxu0 %vm254_vm0, %v4764_v32 }
  0xde   :  { %3817 = vmatmul.mubr.msk.f32.gmra.mrb[2].mxu0 %vm254_vm0, %v4761_v31 }
 0x1a8   :  { %v3825_v34 = vpop.f32.mrb[0].mxu1 }
 0x1a9   :  { %v430_v35 = vpop.f32.mrb[1].mxu1 }
 0x1aa   :  { %3831 = vmatprep.mubr.msk.f32.mxu0 %vm452_vm9, %v430_v35  ;;  %v846_v35 = vld [vmem:[%s4547_s14 + $0x10] sm:$0xff] }
 0x1ab   :  { %3832 = vmatmul.mubr.msk.f32.vlgmr.msra.gmra.mrb[4].mxu0 %vm452_vm9, %v3825_v34 }
 0x1ac   :  { %v3828_v37 = vpop.f32.mrb[2].mxu1  ;;  %3838 = vmatpush3.msra.mxu0 %v449_v33  ;;  %v845_v33 = vld [vmem:[%s4547_s14 + $0x8] sm:$0xff] }
 0x1ad   :  { %v3815_v38 = vpop.f32.mrb[0].mxu0  ;;  %v440_v39 = vpop.f32.mrb[3].mxu1  ;;  %3845 = vmatprep.subr.msk.mxu0 %vm660_vm10, %v451_v36  ;;  %v4142_v34 = vpack.c.bf16 %v845_v33, %v844_v30  ;;  %v1036_v33 = vld [vmem:[%s4557_s24 + $0x18] sm:$0xff] }
 0x1ae   :  { %v333_v40 = vpop.f32.mrb[1].mxu0  ;;  %3834 = vmatprep.mubr.msk.f32.mxu0 %vm452_vm9, %v440_v39 }
 0x1af   :  { %3835 = vmatmul.mubr.msk.f32.gmra.mrb[6].mxu0 %vm452_vm9, %v3828_v37  ;;  %4143 = vmatprep.subr.bf16.mxu1 %v4142_v34 }
 0x1b0   :  { %3839 = vmatprep.mubr.msk.f32.mxu0 %vm452_vm9, %v333_v40  ;;  %4145 = vmatpush3.bf16.msra.mxu1 %v4142_v34  ;;  %v1037_v34 = vld [vmem:[%s4557_s24 + $0x20] sm:$0xff] }
 0x1b1   :  { %v3818_v41 = vpop.f32.mrb[2].mxu0 }
 0x1b2   :  { %v343_v42 = vpop.f32.mrb[3].mxu0 }
 0x1b3   :  { %3840 = vmatmul.mubr.msk.f32.vlgmr.msra.gmra.mrb[4].mxu0 %vm452_vm9, %v3815_v38 }
 0x1b4   :  { %3842 = vmatprep.mubr.msk.f32.mxu0 %vm452_vm9, %v343_v42  ;;  %3846 = vmatpush3.msk.msra.mxu0 %vm660_vm10, %v451_v36  ;;  %v847_v36 = vld [vmem:[%s4547_s14 + $0x18] sm:$0xff]  ;;  %s5133_s14 = sld [smem:[#allocation16_spill]] }
 0x1b5   :  { %v4146_v37 = vpack.c.bf16 %v847_v36, %v846_v35  ;;  %v4162_v36 = vpack.c.bf16 %v1037_v34, %v1036_v33  ;;  %v1521_v34 = vld [vmem:[%s5127_s17 + $0x20] sm:$0xff] }
 0x1b7   :  { %3843 = vmatmul.mubr.msk.f32.gmra.mrb[6].mxu0 %vm452_vm9, %v3818_v41  ;;  %4147 = vmatprep.subr.bf16.mxu1 %v4146_v37 }
 0x1b8   :  { %3847 = vmatprep.mubr.msk.f32.mxu0 %vm647_vm11, %v178_v43  ;;  %4149 = vmatpush3.bf16.msra.mxu1 %v4146_v37  ;;  %v1033_v37 = vld [vmem:[%s4557_s24] sm:$0xff] }
 0x1bb   :  { %3848 = vmatmul.mubr.msk.f32.vlgmr.msra.gmra.mrb[4].mxu0 %vm647_vm11, %v179_v44 }
 0x1bc   :  { %3850 = vmatprep.mubr.msk.f32.mxu0 %vm647_vm11, %v180_v45 }
 0x1bf   :  { %3851 = vmatmul.mubr.msk.f32.gmra.mrb[6].mxu0 %vm647_vm11, %v181_v46 }
 0x28e   :  { %v3849_v48 = vpop.f32.mrb[4].mxu0 }
 0x28f   :  { %v761_v49 = vadd.f32 %v3849_v48, %v3524_v47  ;;  %v730_v50 = vpop.f32.mrb[5].mxu0 }
 0x290   :  { %v760_v51 = vadd.f32 %v3524_v47, %v730_v50 }
 0x291   :  { %v765_v52 = vmax.f32 %v761_v49, 0.0 }
 0x292   :  { %v764_v53 = vmax.f32 %v760_v51, 0.0  ;;  %v3852_v54 = vpop.f32.mrb[6].mxu0  ;;  %v3525_v51 = vld [vmem:[%s4537_s3] ss:$0 sm:$0xff]  ;;  %s5131_s3 = sld [smem:[#allocation13_spill]] }
 0x293   :  { %v740_v55 = vpop.f32.mrb[7].mxu0  ;;  %v774_v56 = vsel %vm770_vm12, %v765_v52, 0.0  ;;  %v763_v57 = vadd.f32 %v3852_v54, %v3524_v47 }
 0x294   :  { %v762_v58 = vadd.f32 %v3524_v47, %v740_v55  ;;  %775 = vadd.xlane.f32.xlu1 %v774_v56  ;;  %v771_v59 = vsel %vm770_vm12, %v764_v53, 0.0  ;;  %v3526_v55 = vld [vmem:[%s4542_s8] ss:$0 sm:$0xff]  ;;  %s5132_s8 = sld [smem:[#allocation15_spill]] }
 0x295   :  { %772 = vadd.xlane.f32.xlu0 %v771_v59  ;;  %v767_v61 = vmax.f32 %v763_v57, 0.0 }
 0x296   :  { %v766_v60 = vmax.f32 %v762_v58, 0.0 }
 0x297   :  { %v780_v63 = vsel %vm770_vm12, %v767_v61, 0.0 }
 0x298   :  { %v777_v62 = vsel %vm770_vm12, %v766_v60, 0.0 }
 0x299   :  { %778 = vadd.xlane.f32.xlu0 %v777_v62 }
 0x29d   :  { %781 = vadd.xlane.f32.xlu0 %v780_v63 }
 0x321   :  { %v776_v0 = vpop.xlane.xlu1 %775 }
 0x322   :  { %v785_v1 = vmul.f32 0.03125, %v776_v0  ;;  %v773_v2 = vpop.xlane.xlu0 %772 }
 0x323   :  { %v784_v3 = vmul.f32 0.03125, %v773_v2 }
 0x324   :  { %v789_v4 = vsub.f32 %v765_v52, %v785_v1 }
 0x325   :  { %v788_v6 = vsub.f32 %v764_v53, %v784_v3 }
 0x326   :  { %v779_v8 = vpop.xlane.xlu0 %778  ;;  %v793_v9 = vmul.f32 %v789_v4, %v789_v4 }
 0x327   :  { %v786_v10 = vmul.f32 0.03125, %v779_v8  ;;  %v792_v11 = vmul.f32 %v788_v6, %v788_v6  ;;  %v3500_v8 = vld [vmem:[%s4512_s13] ss:$0 sm:$0xff]  ;;  %s5126_s13 = sld [smem:[#allocation9_spill]] }
 0x328   :  { %v799_v12 = vsel %vm770_vm12, %v793_v9, 0.0 }
 0x329   :  { %v790_v13 = vsub.f32 %v766_v60, %v786_v10  ;;  %800 = vadd.xlane.f32.xlu0 %v799_v12  ;;  %v796_v15 = vsel %vm770_vm12, %v792_v11, 0.0  ;;  %v3527_v10 = vld [vmem:[%s4552_s19] ss:$0 sm:$0xff]  ;;  %s5134_s19 = sld [smem:[#allocation17_spill]] }
 0x32a   :  { %797 = vadd.xlane.f32.xlu1 %v796_v15  ;;  %v782_v16 = vpop.xlane.xlu0 %781 }
 0x32b   :  { %v787_v17 = vmul.f32 0.03125, %v782_v16  ;;  %v794_v20 = vmul.f32 %v790_v13, %v790_v13 }
 0x32d   :  { %v791_v21 = vsub.f32 %v767_v61, %v787_v17  ;;  %v802_v24 = vsel %vm770_vm12, %v794_v20, 0.0 }
 0x32e   :  { %803 = vadd.xlane.f32.xlu1 %v802_v24  ;;  %v1035_v24 = vld [vmem:[%s4557_s24 + $0x10] sm:$0xff] }
 0x32f   :  { %v795_v25 = vmul.f32 %v791_v21, %v791_v21 }
 0x331   :  { %v805_v29 = vsel %vm770_vm12, %v795_v25, 0.0 }
 0x332   :  { %806 = vadd.xlane.f32.xlu0 %v805_v29 }
 0x3b6   :  { %v801_v38 = vpop.xlane.xlu0 %800 }
 0x3b7   :  { %v809_v39 = vmul.f32 0.03125, %v801_v38  ;;  %v798_v40 = vpop.xlane.xlu1 %797 }
 0x3b8   :  { %v808_v41 = vmul.f32 0.03125, %v798_v40 }
 0x3b9   :  { %v813_v42 = vadd.f32 1e-05, %v809_v39 }
 0x3ba   :  { %v812_v43 = vadd.f32 1e-05, %v808_v41 }
 0x3bb   :  { %4387 = vrsqrt.f32 %v813_v42  ;;  %v804_v44 = vpop.xlane.xlu1 %803 }
 0x3bc   :  { %4389 = vrsqrt.f32 %v812_v43  ;;  %v810_v45 = vmul.f32 0.03125, %v804_v44 }
 0x3be   :  { %v814_v46 = vadd.f32 1e-05, %v810_v45 }
 0x3bf   :  { %v807_v47 = vpop.xlane.xlu0 %806 }
 0x3c0   :  { %4391 = vrsqrt.f32 %v814_v46  ;;  %v811_v48 = vmul.f32 0.03125, %v807_v47 }
 0x3c2   :  { %v815_v49 = vadd.f32 1e-05, %v811_v48 }
 0x3c4   :  { %4393 = vrsqrt.f32 %v815_v49 }
 0x3c5   :  { %v4388_v50 = vpop.eup %4387 }
 0x3c6   :  { %v4390_v52 = vpop.eup %4389  ;;  %v821_v53 = vmul.f32 %v4388_v50, %v789_v4  ;;  %v185_v4 = vshrl.u32 %v182_v14, 7 }
 0x3c7   :  { %v820_v54 = vmul.f32 %v4390_v52, %v788_v6 }
 0x3c8   :  { %v831_v56 = vmul.f32 %v3525_v51, %v821_v53  ;;  %v186_v6 = vadd.s32 8, %v185_v4  ;;  %vm248_vm13 = vcmp.eq.s32.totalorder %v3500_v8, %v185_v4 }
 0x3c9   :  { %v830_v57 = vmul.f32 %v3525_v51, %v820_v54  ;;  %v4806_v9 = vsel %vm248_vm13, 1.0, %v4490_v18 }
 0x3ca   :  { %v4392_v58 = vpop.eup %4391  ;;  %v841_v61 = vadd.f32 %v3526_v55, %v831_v56  ;;  %vm249_vm14 = vcmp.eq.s32.totalorder %v3500_v8, %v186_v6  ;;  %v1255_v56 = vld [vmem:[%s5123_s0] sm:$0xff] }
 0x3cb   :  { %v840_v59 = vadd.f32 %v3526_v55, %v830_v57  ;;  %v822_v60 = vmul.f32 %v4392_v58, %v790_v13  ;;  %v4829_v35 = vsel %vm249_vm14, 1.0, %v4490_v18  ;;  %v3538_v18 = vld [vmem:[%s4562_s30] ss:$0 sm:$0xff]  ;;  %v1256_v57 = vld [vmem:[%s5123_s0 + $0x8] sm:$0xff]  ;;  %s5136_s30 = sld [smem:[#allocation18_spill]] }
 0x3cc   :  { %v4166_v58 = vpack.c.bf16 %v1256_v57, %v1255_v56  ;;  %v3539_v6 = vld [vmem:[%s5124_s5] ss:$0 sm:$0xff]  ;;  %v1527_v57 = vld [vmem:[%s5127_s17 + $0x50] sm:$0xff] }
 0x3cd   :  { %3861 = vmatprep.mubr.msk.f32.mxu1 %vm770_vm12, %v840_v59  ;;  %v832_v62 = vmul.f32 %v3525_v51, %v822_v60  ;;  %v1257_v59 = vld [vmem:[%s5123_s0 + $0x10] sm:$0xff]  ;;  %v1258_v60 = vld [vmem:[%s5123_s0 + $0x18] sm:$0xff] }
 0x3ce   :  { %v4394_v63 = vpop.eup %4393  ;;  %3862 = vmatmul.mubr.msk.f32.vlgmr.msra.gmra.mrb[4].mxu1 %vm770_vm12, %v841_v61  ;;  %4167 = vmatprep.subr.bf16.mxu0 %v4166_v58  ;;  %v4170_v61 = vpack.c.bf16 %v1258_v60, %v1257_v59  ;;  %v3564_v60 = vld [vmem:[%s5128_s21] ss:$0 sm:$0xff] }
 0x3cf   :  { %v842_v0 = vadd.f32 %v3526_v55, %v832_v62  ;;  %v823_v1 = vmul.f32 %v4394_v63, %v791_v21  ;;  %v1034_v21 = vld [vmem:[%s4557_s24 + $0x8] sm:$0xff]  ;;  %4169 = vmatpush3.bf16.msra.mxu0 %v4166_v58  ;;  %v1528_v58 = vld [vmem:[%s5127_s17 + $0x58] sm:$0xff]  ;;  %s5135_s24 = sld [smem:[#allocation20_spill]] }
 0x3d0   :  { %v4158_v30 = vpack.c.bf16 %v1035_v24, %v1034_v21  ;;  %4171 = vmatprep.subr.bf16.mxu0 %v4170_v61  ;;  %v3541_v24 = vld [vmem:[%s5126_s13] ss:$0 sm:$0xff]  ;;  %v4202_v59 = vpack.c.bf16 %v1528_v58, %v1527_v57 }
 0x3d1   :  { %3864 = vmatprep.mubr.msk.f32.mxu1 %vm770_vm12, %v842_v0  ;;  %v833_v2 = vmul.f32 %v3525_v51, %v823_v1 }
 0x3d3   :  { %v843_v3 = vadd.f32 %v3526_v55, %v833_v2  ;;  %4173 = vmatpush3.bf16.msra.mxu0 %v4170_v61 }
 0x3d5   :  { %3865 = vmatmul.mubr.msk.f32.gmra.mrb[6].mxu1 %vm770_vm12, %v843_v3 }
 0x3d6   :  { %3875 = vmatprep.mubr.msk.f32.mxu1 %vm770_vm12, %v4806_v9 }
 0x4a1   :  { %v3863_v11 = vpop.f32.mrb[4].mxu1 }
 0x4a2   :  { %v4811_v12 = vadd.f32 %v3863_v11, %v3527_v10  ;;  %v933_v13 = vpop.f32.mrb[5].mxu1 }
 0x4a3   :  { %v4813_v14 = vadd.f32 %v3527_v10, %v933_v13  ;;  %v3540_v13 = vld [vmem:[%s5125_s9] ss:$0 sm:$0xff] }
 0x4a5   :  { %v4150_v15 = vpack.c.bf16 %v4811_v12, %v4813_v14 }
 0x4a7   :  { %4151 = vmatprep.subr.bf16.mxu1 %v4150_v15 }
 0x4a8   :  { %v3866_v16 = vpop.f32.mrb[6].mxu1  ;;  %4153 = vmatpush3.bf16.msra.mxu1 %v4150_v15 }
 0x4a9   :  { %v4817_v17 = vadd.f32 %v3866_v16, %v3527_v10  ;;  %v943_v20 = vpop.f32.mrb[7].mxu1 }
 0x4aa   :  { %v4821_v25 = vadd.f32 %v3527_v10, %v943_v20 }
 0x4ac   :  { %v4154_v29 = vpack.c.bf16 %v4817_v17, %v4821_v25 }
 0x4ae   :  { %4155 = vmatprep.subr.bf16.mxu1 %v4154_v29 }
 0x4af   :  { %4157 = vmatpush3.bf16.msra.mxu1 %v4154_v29 }
 0x4b0   :  { %4159 = vmatprep.subr.bf16.mxu1 %v4158_v30 }
 0x4b2   :  { %3876 = vmatmul.mubr.msk.f32.vlgmr.msra.gmra.mrb[8].mxu1 %vm770_vm12, %v4829_v35 }
 0x4b3   :  { %4161 = vmatpush3.bf16.msra.mxu1 %v4158_v30 }
 0x4b4   :  { %4163 = vmatprep.subr.bf16.mxu1 %v4162_v36 }
 0x4b7   :  { %4165 = vmatpush3.bf16.msra.mxu1 %v4162_v36  ;;  %v1522_v36 = vld [vmem:[%s5127_s17 + $0x28] sm:$0xff] }
 0x4b8   :  { %3889 = vmatprep.subr.mxu1 %v1033_v37 }
 0x585   :  { %v3877_v38 = vpop.f32.mrb[8].mxu1 }
 0x586   :  { %v1024_v39 = vpop.f32.mrb[9].mxu1 }
 0x587   :  { %3886 = vmatprep.mubr.msk.f32.mxu1 %vm770_vm12, %v1024_v39  ;;  %v4182_v39 = vpack.c.bf16 %v1522_v36, %v1521_v34 }
 0x588   :  { %3887 = vmatmul.mubr.msk.f32.vlgmr.msra.gmra.mrb[10].mxu1 %vm770_vm12, %v3877_v38 }
 0x589   :  { %3890 = vmatpush3.msra.mxu1 %v1033_v37  ;;  %3891 = vmatprep.mubr.msk.f32.mxu1 %vm452_vm9, %v4716_v5 }
 0x590   :  { %3892 = vmatmul.mubr.msk.f32.vlgmr.msra.gmra.mrb[10].mxu1 %vm452_vm9, %v4720_v7 }
 0x591   :  { %3909 = vmatprep.mubr.msk.f32.mxu1 %vm254_vm0, %v4752_v28 }
 0x663   :  { %v3893_v40 = vpop.f32.mrb[10].mxu1 }
 0x664   :  { %v1208_v41 = vadd.f32 %v3893_v40, %v3538_v18  ;;  %v1191_v42 = vpop.f32.mrb[11].mxu1  ;;  %v1524_v40 = vld [vmem:[%s5127_s17 + $0x38] sm:$0xff] }
 0x665   :  { %v1207_v43 = vadd.f32 %v3538_v18, %v1191_v42  ;;  %v1523_v18 = vld [vmem:[%s5127_s17 + $0x30] sm:$0xff]  ;;  %v1517_v42 = vld [vmem:[%s5127_s17] sm:$0xff] }
 0x666   :  { %v1210_v44 = vmax.f32 %v1208_v41, 0.0  ;;  %v4186_v41 = vpack.c.bf16 %v1524_v40, %v1523_v18 }
 0x667   :  { %v1209_v45 = vmax.f32 %v1207_v43, 0.0  ;;  %v1518_v43 = vld [vmem:[%s5127_s17 + $0x8] sm:$0xff] }
 0x668   :  { %v1216_v46 = vsel %vm770_vm12, %v1210_v44, 0.0 }
 0x669   :  { %1217 = vadd.xlane.f32.xlu0 %v1216_v46  ;;  %v1213_v5 = vsel %vm770_vm12, %v1209_v45, 0.0  ;;  %v1520_v46 = vld [vmem:[%s5127_s17 + $0x18] sm:$0xff] }
 0x66a   :  { %1214 = vadd.xlane.f32.xlu1 %v1213_v5 }
 0x6f6   :  { %v1218_v47 = vpop.xlane.xlu0 %1217 }
 0x6f7   :  { %v1220_v7 = vmul.f32 0.03125, %v1218_v47  ;;  %v1215_v48 = vpop.xlane.xlu1 %1214 }
 0x6f8   :  { %v1219_v49 = vmul.f32 0.03125, %v1215_v48 }
 0x6f9   :  { %v1222_v50 = vsub.f32 %v1210_v44, %v1220_v7  ;;  %v4190_v44 = vpack.c.bf16 %v1518_v43, %v1517_v42 }
 0x6fa   :  { %v1221_v51 = vsub.f32 %v1209_v45, %v1219_v49  ;;  %v1519_v45 = vld [vmem:[%s5127_s17 + $0x10] sm:$0xff] }
 0x6fb   :  { %v1224_v52 = vmul.f32 %v1222_v50, %v1222_v50  ;;  %v4194_v49 = vpack.c.bf16 %v1520_v46, %v1519_v45 }
 0x6fc   :  { %v1223_v53 = vmul.f32 %v1221_v51, %v1221_v51 }
 0x6fd   :  { %v1228_v54 = vsel %vm770_vm12, %v1224_v52, 0.0 }
 0x6fe   :  { %1229 = vadd.xlane.f32.xlu0 %v1228_v54  ;;  %v1225_v55 = vsel %vm770_vm12, %v1223_v53, 0.0 }
 0x6ff   :  { %1226 = vadd.xlane.f32.xlu1 %v1225_v55 }
 0x78b   :  { %v1230_v62 = vpop.xlane.xlu0 %1229 }
 0x78c   :  { %v1232_v63 = vmul.f32 0.03125, %v1230_v62  ;;  %v1227_v0 = vpop.xlane.xlu1 %1226 }
 0x78d   :  { %v1231_v1 = vmul.f32 0.03125, %v1227_v0 }
 0x78e   :  { %v1234_v2 = vadd.f32 1e-05, %v1232_v63 }
 0x78f   :  { %v1233_v3 = vadd.f32 1e-05, %v1231_v1 }
 0x790   :  { %4395 = vrsqrt.f32 %v1234_v2 }
 0x791   :  { %4397 = vrsqrt.f32 %v1233_v3 }
 0x79a   :  { %v4396_v4 = vpop.eup %4395 }
 0x79b   :  { %v4398_v8 = vpop.eup %4397  ;;  %v1238_v10 = vmul.f32 %v4396_v4, %v1222_v50  ;;  %v1525_v50 = vld [vmem:[%s5127_s17 + $0x40] sm:$0xff] }
 0x79c   :  { %v1237_v11 = vmul.f32 %v4398_v8, %v1221_v51  ;;  %v1526_v51 = vld [vmem:[%s5127_s17 + $0x48] sm:$0xff] }
 0x79d   :  { %v1246_v15 = vmul.f32 %v3539_v6, %v1238_v10  ;;  %v4198_v56 = vpack.c.bf16 %v1526_v51, %v1525_v50  ;;  %v1914_v50 = vld [vmem:[%s5129_s25 + $0x8] sm:$0xff] }
 0x79e   :  { %v1245_v16 = vmul.f32 %v3539_v6, %v1237_v11 }
 0x79f   :  { %v1254_v21 = vadd.f32 %v3540_v13, %v1246_v15 }
 0x7a0   :  { %v1253_v20 = vadd.f32 %v3540_v13, %v1245_v16 }
 0x7a2   :  { %3902 = vmatprep.mubr.msk.f32.mxu0 %vm770_vm12, %v1253_v20 }
 0x7a3   :  { %3903 = vmatmul.mubr.msk.f32.vlgmr.msra.gmra.mrb[8].mxu0 %vm770_vm12, %v1254_v21 }
 0x7a4   :  { %3919 = vmatprep.mubr.msk.f32.mxu0 %vm254_vm0, %v4731_v19 }
 0x876   :  { %v3904_v29 = vpop.f32.mrb[8].mxu0 }
 0x877   :  { %v4858_v30 = vadd.f32 %v3904_v29, %v3541_v24  ;;  %v1338_v33 = vpop.f32.mrb[9].mxu0 }
 0x878   :  { %v4862_v37 = vadd.f32 %v3541_v24, %v1338_v33 }
 0x87a   :  { %v4174_v38 = vpack.c.bf16 %v4858_v30, %v4862_v37 }
 0x87c   :  { %4175 = vmatprep.subr.bf16.mxu1 %v4174_v38  ;;  %4179 = vmatprep.subr.bf16.mxu0 %v4174_v38 }
 0x87d   :  { %4177 = vmatpush3.bf16.msra.mxu1 %v4174_v38  ;;  %4181 = vmatpush3.bf16.msra.mxu0 %v4174_v38 }
 0x87e   :  { %4183 = vmatprep.subr.bf16.mxu1 %v4182_v39 }
 0x880   :  { %3910 = vmatmul.mubr.msk.f32.vlgmr.msra.gmra.mrb[12].mxu1 %vm254_vm0, %v4749_v27  ;;  %3920 = vmatmul.mubr.msk.f32.vlgmr.msra.gmra.mrb[10].mxu0 %vm254_vm0, %v4739_v23 }
 0x881   :  { %3912 = vmatprep.mubr.msk.f32.mxu1 %vm254_vm0, %v4764_v32  ;;  %3922 = vmatprep.mubr.msk.f32.mxu0 %vm254_vm0, %v4736_v22 }
 0x882   :  { %4185 = vmatpush3.bf16.msra.mxu1 %v4182_v39 }
 0x883   :  { %4187 = vmatprep.subr.bf16.mxu1 %v4186_v41 }
 0x884   :  { %3913 = vmatmul.mubr.msk.f32.gmra.mrb[14].mxu1 %vm254_vm0, %v4761_v31  ;;  %3923 = vmatmul.mubr.msk.f32.gmra.mrb[12].mxu0 %vm254_vm0, %v4746_v26 }
 0x886   :  { %4189 = vmatpush3.bf16.msra.mxu1 %v4186_v41 }
 0x887   :  { %4191 = vmatprep.subr.bf16.mxu1 %v4190_v44 }
 0x953   :  { %v3911_v5 = vpop.f32.mrb[12].mxu1  ;;  %v3921_v47 = vpop.f32.mrb[10].mxu0 }
 0x954   :  { %v1413_v7 = vpop.f32.mrb[13].mxu1  ;;  %v1498_v48 = vpop.f32.mrb[11].mxu0 }
 0x955   :  { %3933 = vmatprep.mubr.msk.f32.mxu1 %vm770_vm12, %v1498_v48 }
 0x956   :  { %3934 = vmatmul.mubr.msk.f32.vlgmr.msra.gmra.mrb[16].mxu1 %vm770_vm12, %v3921_v47 }
 0x957   :  { %v3914_v52 = vpop.f32.mrb[14].mxu1  ;;  %v3924_v53 = vpop.f32.mrb[12].mxu0  ;;  %4193 = vmatpush3.bf16.msra.mxu1 %v4190_v44 }
 0x958   :  { %v1423_v54 = vpop.f32.mrb[15].mxu1  ;;  %v1508_v55 = vpop.f32.mrb[13].mxu0  ;;  %4195 = vmatprep.subr.bf16.mxu1 %v4194_v49 }
 0x959   :  { %3936 = vmatprep.mubr.msk.f32.mxu1 %vm770_vm12, %v1508_v55 }
 0x95a   :  { %3937 = vmatmul.mubr.msk.f32.gmra.mrb[18].mxu1 %vm770_vm12, %v3924_v53  ;;  %v1916_v53 = vld [vmem:[%s5129_s25 + $0x18] sm:$0xff] }
 0x95b   :  { %4197 = vmatpush3.bf16.msra.mxu1 %v4194_v49  ;;  %3947 = vmatprep.mubr.msk.f32.mxu1 %vm770_vm12, %v1413_v7  ;;  %v1913_v49 = vld [vmem:[%s5129_s25] sm:$0xff] }
 0x95c   :  { %4199 = vmatprep.subr.bf16.mxu1 %v4198_v56  ;;  %v4206_v51 = vpack.c.bf16 %v1914_v50, %v1913_v49 }
 0x95e   :  { %3948 = vmatmul.mubr.msk.f32.vlgmr.msra.gmra.mrb[16].mxu1 %vm770_vm12, %v3911_v5  ;;  %4207 = vmatprep.subr.bf16.mxu0 %v4206_v51 }
 0x95f   :  { %3950 = vmatprep.mubr.msk.f32.mxu1 %vm770_vm12, %v1423_v54  ;;  %4201 = vmatpush3.bf16.msra.mxu1 %v4198_v56 }
 0x960   :  { %4203 = vmatprep.subr.bf16.mxu1 %v4202_v59  ;;  %4209 = vmatpush3.bf16.msra.mxu0 %v4206_v51  ;;  %v2102_v51 = vld [vmem:[%s5133_s14 + $0x30] sm:$0xff] }
 0x962   :  { %3951 = vmatmul.mubr.msk.f32.gmra.mrb[18].mxu1 %vm770_vm12, %v3914_v52  ;;  %v1915_v52 = vld [vmem:[%s5129_s25 + $0x10] sm:$0xff] }
 0x963   :  { %4205 = vmatpush3.bf16.msra.mxu1 %v4202_v59  ;;  %3961 = vmatprep.mubr.msk.f32.mxu1 %vm770_vm12, %v4813_v14  ;;  %v4210_v54 = vpack.c.bf16 %v1916_v53, %v1915_v52  ;;  %v2103_v52 = vld [vmem:[%s5133_s14 + $0x38] sm:$0xff] }
 0x964   :  { %v4226_v53 = vpack.c.bf16 %v2103_v52, %v2102_v51 }
 0x965   :  { %4211 = vmatprep.subr.bf16.mxu0 %v4210_v54 }
 0x966   :  { %3962 = vmatmul.mubr.msk.f32.vlgmr.msra.gmra.mrb[16].mxu1 %vm770_vm12, %v4811_v12  ;;  %4213 = vmatpush3.bf16.msra.mxu0 %v4210_v54  ;;  %v2096_v54 = vld [vmem:[%s5133_s14] sm:$0xff] }
 0x967   :  { %3964 = vmatprep.mubr.msk.f32.mxu1 %vm770_vm12, %v4821_v25 }
 0x96a   :  { %3965 = vmatmul.mubr.msk.f32.gmra.mrb[18].mxu1 %vm770_vm12, %v4817_v17 }
 0xa39   :  { %v3963_v61 = vpop.f32.mrb[16].mxu1 }
 0xa3a   :  { %v1832_v62 = vadd.f32 %v3963_v61, %v3564_v60  ;;  %v1801_v63 = vpop.f32.mrb[17].mxu1 }
 0xa3b   :  { %v1831_v0 = vadd.f32 %v3564_v60, %v1801_v63 }
 0xa3c   :  { %v1836_v1 = vmax.f32 %v1832_v62, 0.0 }
 0xa3d   :  { %v1835_v2 = vmax.f32 %v1831_v0, 0.0  ;;  %v3966_v3 = vpop.f32.mrb[18].mxu1 }
 0xa3e   :  { %v1834_v4 = vadd.f32 %v3966_v3, %v3564_v60  ;;  %v1811_v6 = vpop.f32.mrb[19].mxu1  ;;  %v1844_v8 = vsel %vm770_vm12, %v1836_v1, 0.0 }
 0xa3f   :  { %v1833_v10 = vadd.f32 %v3564_v60, %v1811_v6  ;;  %1845 = vadd.xlane.f32.xlu0 %v1844_v8  ;;  %v1841_v11 = vsel %vm770_vm12, %v1835_v2, 0.0 }
 0xa40   :  { %v1838_v13 = vmax.f32 %v1834_v4, 0.0  ;;  %1842 = vadd.xlane.f32.xlu1 %v1841_v11  ;;  %v3565_v4 = vld [vmem:[%s5130_s29] ss:$0 sm:$0xff] }
 0xa41   :  { %v1837_v15 = vmax.f32 %v1833_v10, 0.0  ;;  %v3566_v11 = vld [vmem:[%s5131_s3] ss:$0 sm:$0xff] }
 0xa42   :  { %v1850_v16 = vsel %vm770_vm12, %v1838_v13, 0.0 }
 0xa43   :  { %1851 = vadd.xlane.f32.xlu0 %v1850_v16  ;;  %v1847_v20 = vsel %vm770_vm12, %v1837_v15, 0.0 }
 0xa44   :  { %1848 = vadd.xlane.f32.xlu1 %v1847_v20 }
 0xacc   :  { %v1846_v21 = vpop.xlane.xlu0 %1845 }
 0xacd   :  { %v1854_v24 = vmul.f32 0.03125, %v1846_v21  ;;  %v1843_v29 = vpop.xlane.xlu1 %1842 }
 0xace   :  { %v1853_v33 = vmul.f32 0.03125, %v1843_v29 }
 0xacf   :  { %v1858_v34 = vsub.f32 %v1836_v1, %v1854_v24 }
 0xad0   :  { %v1857_v36 = vsub.f32 %v1835_v2, %v1853_v33  ;;  %v1852_v38 = vpop.xlane.xlu0 %1851 }
 0xad1   :  { %v1856_v39 = vmul.f32 0.03125, %v1852_v38  ;;  %v1849_v18 = vpop.xlane.xlu1 %1848  ;;  %v1862_v40 = vmul.f32 %v1858_v34, %v1858_v34 }
 0xad2   :  { %v1855_v41 = vmul.f32 0.03125, %v1849_v18  ;;  %v1861_v42 = vmul.f32 %v1857_v36, %v1857_v36  ;;  %v3567_v18 = vld [vmem:[%s5132_s8] ss:$0 sm:$0xff] }
 0xad3   :  { %v1860_v43 = vsub.f32 %v1838_v13, %v1856_v39  ;;  %v1868_v44 = vsel %vm770_vm12, %v1862_v40, 0.0 }
 0xad4   :  { %v1859_v45 = vsub.f32 %v1837_v15, %v1855_v41  ;;  %1869 = vadd.xlane.f32.xlu0 %v1868_v44  ;;  %v1865_v46 = vsel %vm770_vm12, %v1861_v42, 0.0 }
 0xad5   :  { %1866 = vadd.xlane.f32.xlu1 %v1865_v46  ;;  %v1864_v5 = vmul.f32 %v1860_v43, %v1860_v43 }
 0xad6   :  { %v1863_v47 = vmul.f32 %v1859_v45, %v1859_v45 }
 0xad7   :  { %v1874_v7 = vsel %vm770_vm12, %v1864_v5, 0.0 }
 0xad8   :  { %1875 = vadd.xlane.f32.xlu0 %v1874_v7  ;;  %v1871_v48 = vsel %vm770_vm12, %v1863_v47, 0.0  ;;  %v2100_v47 = vld [vmem:[%s5133_s14 + $0x20] sm:$0xff]  ;;  %v2101_v7 = vld [vmem:[%s5133_s14 + $0x28] sm:$0xff] }
 0xad9   :  { %1872 = vadd.xlane.f32.xlu1 %v1871_v48  ;;  %v4222_v50 = vpack.c.bf16 %v2101_v7, %v2100_v47 }
 0xb61   :  { %v1870_v55 = vpop.xlane.xlu0 %1869 }
 0xb62   :  { %v1878_v56 = vmul.f32 0.03125, %v1870_v55  ;;  %v1867_v57 = vpop.xlane.xlu1 %1866  ;;  %v2097_v55 = vld [vmem:[%s5133_s14 + $0x8] sm:$0xff] }
 0xb63   :  { %v1877_v58 = vmul.f32 0.03125, %v1867_v57  ;;  %v2098_v57 = vld [vmem:[%s5133_s14 + $0x10] sm:$0xff] }
 0xb64   :  { %v1882_v59 = vadd.f32 1e-05, %v1878_v56  ;;  %v4230_v56 = vpack.c.bf16 %v2097_v55, %v2096_v54 }
 0xb65   :  { %v1881_v60 = vadd.f32 1e-05, %v1877_v58  ;;  %v1876_v61 = vpop.xlane.xlu0 %1875  ;;  %v2099_v58 = vld [vmem:[%s5133_s14 + $0x18] sm:$0xff] }
 0xb66   :  { %4399 = vrsqrt.f32 %v1882_v59  ;;  %v1880_v62 = vmul.f32 0.03125, %v1876_v61  ;;  %v1873_v63 = vpop.xlane.xlu1 %1872  ;;  %v4234_v61 = vpack.c.bf16 %v2099_v58, %v2098_v57  ;;  %v3581_v58 = vld [vmem:[%s5138_s20] ss:$0 sm:$0xff] }
 0xb67   :  { %4401 = vrsqrt.f32 %v1881_v60  ;;  %v1879_v0 = vmul.f32 0.03125, %v1873_v63 }
 0xb68   :  { %v1884_v1 = vadd.f32 1e-05, %v1880_v62  ;;  %v3578_v62 = vld [vmem:[%s5134_s19] ss:$0 sm:$0xff] }
 0xb69   :  { %v1883_v2 = vadd.f32 1e-05, %v1879_v0 }
 0xb6a   :  { %4403 = vrsqrt.f32 %v1884_v1 }
 0xb6b   :  { %4405 = vrsqrt.f32 %v1883_v2 }
 0xb70   :  { %v4400_v3 = vpop.eup %4399 }
 0xb71   :  { %v4402_v6 = vpop.eup %4401  ;;  %v1890_v8 = vmul.f32 %v4400_v3, %v1858_v34 }
 0xb72   :  { %v1889_v10 = vmul.f32 %v4402_v6, %v1857_v36 }
 0xb73   :  { %v1900_v13 = vmul.f32 %v3565_v4, %v1890_v8 }
 0xb74   :  { %v4404_v15 = vpop.eup %4403  ;;  %v1899_v16 = vmul.f32 %v3565_v4, %v1889_v10 }
 0xb75   :  { %v4406_v20 = vpop.eup %4405  ;;  %v1892_v21 = vmul.f32 %v4404_v15, %v1860_v43  ;;  %v1910_v33 = vadd.f32 %v3566_v11, %v1900_v13 }
 0xb76   :  { %v1909_v24 = vadd.f32 %v3566_v11, %v1899_v16  ;;  %v1891_v29 = vmul.f32 %v4406_v20, %v1859_v45 }
 0xb77   :  { %v1902_v38 = vmul.f32 %v3565_v4, %v1892_v21 }
 0xb78   :  { %3975 = vmatprep.mubr.msk.f32.mxu0 %vm770_vm12, %v1909_v24  ;;  %v1901_v39 = vmul.f32 %v3565_v4, %v1891_v29 }
 0xb79   :  { %3976 = vmatmul.mubr.msk.f32.vlgmr.msra.gmra.mrb[14].mxu0 %vm770_vm12, %v1910_v33  ;;  %v1912_v36 = vadd.f32 %v3566_v11, %v1902_v38  ;;  %v2321_v33 = vld [vmem:[%s5135_s24] sm:$0xff]  ;;  %v2322_v38 = vld [vmem:[%s5135_s24 + $0x8] sm:$0xff] }
 0xb7a   :  { %v1911_v34 = vadd.f32 %v3566_v11, %v1901_v39  ;;  %v4238_v39 = vpack.c.bf16 %v2322_v38, %v2321_v33  ;;  %v2605_v38 = vld [vmem:[%s5139_s15 + $0x50] sm:$0xff] }
 0xb7c   :  { %3978 = vmatprep.mubr.msk.f32.mxu0 %vm770_vm12, %v1911_v34  ;;  %4239 = vmatprep.subr.bf16.mxu1 %v4238_v39  ;;  %v2323_v34 = vld [vmem:[%s5135_s24 + $0x10] sm:$0xff] }
 0xb7d   :  { %3979 = vmatmul.mubr.msk.f32.gmra.mrb[16].mxu0 %vm770_vm12, %v1912_v36  ;;  %v2324_v36 = vld [vmem:[%s5135_s24 + $0x18] sm:$0xff]  ;;  %4241 = vmatpush3.bf16.msra.mxu1 %v4238_v39 }
 0xb7e   :  { %3989 = vmatprep.mubr.msk.f32.mxu0 %vm770_vm12, %v4806_v9  ;;  %v2606_v39 = vld [vmem:[%s5139_s15 + $0x58] sm:$0xff] }
 0xc4c   :  { %v3977_v40 = vpop.f32.mrb[14].mxu0 }
 0xc4d   :  { %v4926_v41 = vadd.f32 %v3977_v40, %v3567_v18  ;;  %v2002_v42 = vpop.f32.mrb[15].mxu0 }
 0xc4e   :  { %v4928_v43 = vadd.f32 %v3567_v18, %v2002_v42 }
 0xc50   :  { %v4214_v44 = vpack.c.bf16 %v4926_v41, %v4928_v43  ;;  %v3980_v45 = vpop.f32.mrb[16].mxu0 }
 0xc51   :  { %v4932_v46 = vadd.f32 %v3980_v45, %v3567_v18  ;;  %v2012_v5 = vpop.f32.mrb[17].mxu0 }
 0xc52   :  { %v4936_v48 = vadd.f32 %v3567_v18, %v2012_v5  ;;  %4215 = vmatprep.subr.bf16.mxu0 %v4214_v44  ;;  %v4242_v18 = vpack.c.bf16 %v2324_v36, %v2323_v34  ;;  %v4274_v34 = vpack.c.bf16 %v2606_v39, %v2605_v38  ;;  %v2415_v36 = vadd.f32 %v4928_v43, %v4813_v14 }
 0xc53   :  { %4217 = vmatpush3.bf16.msra.mxu0 %v4214_v44 }
 0xc54   :  { %v4218_v49 = vpack.c.bf16 %v4932_v46, %v4936_v48  ;;  %4243 = vmatprep.subr.bf16.mxu1 %v4242_v18 }
 0xc55   :  { %4245 = vmatpush3.bf16.msra.mxu1 %v4242_v18  ;;  %v2416_v18 = vadd.f32 %v4926_v41, %v4811_v12  ;;  %v3604_v41 = vld [vmem:[%s5140_s18] ss:$0 sm:$0xff] }
 0xc56   :  { %4219 = vmatprep.subr.bf16.mxu0 %v4218_v49 }
 0xc57   :  { %4221 = vmatpush3.bf16.msra.mxu0 %v4218_v49  ;;  %v3579_v49 = vld [vmem:[%s5136_s30] ss:$0 sm:$0xff]  ;;  %v2422_v43 = vadd.f32 %v2416_v18, %v4811_v12 }
 0xc58   :  { %4223 = vmatprep.subr.bf16.mxu0 %v4222_v50 }
 0xc5a   :  { %3990 = vmatmul.mubr.msk.f32.vlgmr.msra.gmra.mrb[18].mxu0 %vm770_vm12, %v4829_v35 }
 0xc5b   :  { %4225 = vmatpush3.bf16.msra.mxu0 %v4222_v50 }
 0xc5c   :  { %4227 = vmatprep.subr.bf16.mxu0 %v4226_v53 }
 0xc5f   :  { %4229 = vmatpush3.bf16.msra.mxu0 %v4226_v53  ;;  %v3580_v53 = vld [vmem:[%s5137_s12] ss:$0 sm:$0xff] }
 0xc60   :  { %4231 = vmatprep.subr.bf16.mxu0 %v4230_v56 }
 0xd2d   :  { %v3991_v59 = vpop.f32.mrb[18].mxu0 }
 0xd2e   :  { %v2087_v60 = vpop.f32.mrb[19].mxu0 }
 0xd2f   :  { %4000 = vmatprep.mubr.msk.f32.mxu0 %vm770_vm12, %v2087_v60 }
 0xd30   :  { %4001 = vmatmul.mubr.msk.f32.vlgmr.msra.gmra.mrb[20].mxu0 %vm770_vm12, %v3991_v59 }
 0xd31   :  { %4233 = vmatpush3.bf16.msra.mxu0 %v4230_v56  ;;  %4011 = vmatprep.mubr.msk.f32.mxu0 %vm770_vm12, %v4862_v37 }
 0xd32   :  { %4235 = vmatprep.subr.bf16.mxu0 %v4234_v61 }
 0xd35   :  { %4237 = vmatpush3.bf16.msra.mxu0 %v4234_v61 }
 0xd38   :  { %4012 = vmatmul.mubr.msk.f32.vlgmr.msra.gmra.mrb[20].mxu0 %vm770_vm12, %v4858_v30 }
 0xd39   :  { %4039 = vmatprep.mubr.msk.f32.mxu0 %vm254_vm0, %v4731_v19 }
 0xe0b   :  { %v4013_v63 = vpop.f32.mrb[20].mxu0 }
 0xe0c   :  { %v2274_v0 = vadd.f32 %v4013_v63, %v3578_v62  ;;  %v2257_v1 = vpop.f32.mrb[21].mxu0 }
 0xe0d   :  { %v2273_v2 = vadd.f32 %v3578_v62, %v2257_v1 }
 0xe0e   :  { %v2276_v3 = vmax.f32 %v2274_v0, 0.0 }
 0xe0f   :  { %v2275_v4 = vmax.f32 %v2273_v2, 0.0  ;;  %v2599_v2 = vld [vmem:[%s5139_s15 + $0x20] sm:$0xff] }
 0xe10   :  { %v2282_v6 = vsel %vm770_vm12, %v2276_v3, 0.0 }
 0xe11   :  { %2283 = vadd.xlane.f32.xlu0 %v2282_v6  ;;  %v2279_v8 = vsel %vm770_vm12, %v2275_v4, 0.0 }
 0xe12   :  { %2280 = vadd.xlane.f32.xlu1 %v2279_v8  ;;  %v2601_v8 = vld [vmem:[%s5139_s15 + $0x30] sm:$0xff] }
 0xe9e   :  { %v2284_v10 = vpop.xlane.xlu0 %2283 }
 0xe9f   :  { %v2286_v11 = vmul.f32 0.03125, %v2284_v10  ;;  %v2281_v19 = vpop.xlane.xlu1 %2280  ;;  %v2602_v10 = vld [vmem:[%s5139_s15 + $0x38] sm:$0xff] }
 0xea0   :  { %v2285_v13 = vmul.f32 0.03125, %v2281_v19 }
 0xea1   :  { %v2288_v15 = vsub.f32 %v2276_v3, %v2286_v11  ;;  %v2600_v3 = vld [vmem:[%s5139_s15 + $0x28] sm:$0xff]  ;;  %v2597_v11 = vld [vmem:[%s5139_s15 + $0x10] sm:$0xff] }
 0xea2   :  { %v2287_v16 = vsub.f32 %v2275_v4, %v2285_v13  ;;  %v4254_v6 = vpack.c.bf16 %v2600_v3, %v2599_v2 }
 0xea3   :  { %v2290_v20 = vmul.f32 %v2288_v15, %v2288_v15 }
 0xea4   :  { %v2289_v21 = vmul.f32 %v2287_v16, %v2287_v16 }
 0xea5   :  { %v2294_v24 = vsel %vm770_vm12, %v2290_v20, 0.0  ;;  %v2604_v20 = vld [vmem:[%s5139_s15 + $0x48] sm:$0xff] }
 0xea6   :  { %2295 = vadd.xlane.f32.xlu0 %v2294_v24  ;;  %v2291_v29 = vsel %vm770_vm12, %v2289_v21, 0.0 }
 0xea7   :  { %2292 = vadd.xlane.f32.xlu1 %v2291_v29 }
 0xf33   :  { %v2296_v40 = vpop.xlane.xlu0 %2295 }
 0xf34   :  { %v2298_v42 = vmul.f32 0.03125, %v2296_v40  ;;  %v2293_v44 = vpop.xlane.xlu1 %2292  ;;  %v2421_v40 = vadd.f32 %v2415_v36, %v4813_v14 }
 0xf35   :  { %v2297_v45 = vmul.f32 0.03125, %v2293_v44  ;;  %v2418_v44 = vadd.f32 %v4932_v46, %v4817_v17 }
 0xf36   :  { %v2300_v5 = vadd.f32 1e-05, %v2298_v42  ;;  %v2417_v42 = vadd.f32 %v4936_v48, %v4821_v25 }
 0xf37   :  { %v2299_v47 = vadd.f32 1e-05, %v2297_v45  ;;  %v2424_v14 = vadd.f32 %v2418_v44, %v4817_v17 }
 0xf38   :  { %4407 = vrsqrt.f32 %v2300_v5  ;;  %v2423_v45 = vadd.f32 %v2417_v42, %v4821_v25 }
 0xf39   :  { %4409 = vrsqrt.f32 %v2299_v47 }
 0xf42   :  { %v4408_v7 = vpop.eup %4407 }
 0xf43   :  { %v4410_v50 = vpop.eup %4409  ;;  %v2304_v51 = vmul.f32 %v4408_v7, %v2288_v15 }
 0xf44   :  { %v2303_v52 = vmul.f32 %v4410_v50, %v2287_v16 }
 0xf45   :  { %v2312_v54 = vmul.f32 %v3579_v49, %v2304_v51 }
 0xf46   :  { %v2311_v55 = vmul.f32 %v3579_v49, %v2303_v52 }
 0xf47   :  { %v2320_v57 = vadd.f32 %v3580_v53, %v2312_v54 }
 0xf48   :  { %v2319_v56 = vadd.f32 %v3580_v53, %v2311_v55 }
 0xf4a   :  { %4022 = vmatprep.mubr.msk.f32.mxu1 %vm770_vm12, %v2319_v56 }
 0xf4b   :  { %4023 = vmatmul.mubr.msk.f32.vlgmr.msra.gmra.mrb[20].mxu1 %vm770_vm12, %v2320_v57 }
 0xf4c   :  { %4029 = vmatprep.mubr.msk.f32.mxu1 %vm254_vm0, %v4752_v28 }
0x101e   :  { %v4024_v59 = vpop.f32.mrb[20].mxu1 }
0x101f   :  { %v2410_v60 = vadd.f32 %v4024_v59, %v3581_v58  ;;  %v2404_v61 = vpop.f32.mrb[21].mxu1 }
0x1020   :  { %v2405_v62 = vadd.f32 %v3581_v58, %v2404_v61 }
0x1021   :  { %v2414_v63 = vadd.f32 %v2410_v60, %v4858_v30 }
0x1022   :  { %v2413_v0 = vadd.f32 %v2405_v62, %v4862_v37 }
0x1023   :  { %v4975_v1 = vadd.f32 %v2414_v63, %v4858_v30  ;;  %v4258_v30 = vpack.c.bf16 %v2602_v10, %v2601_v8 }
0x1024   :  { %v4980_v4 = vadd.f32 %v2413_v0, %v4862_v37  ;;  %v2596_v37 = vld [vmem:[%s5139_s15 + $0x8] sm:$0xff] }
0x1026   :  { %v4246_v28 = vpack.c.bf16 %v4975_v1, %v4980_v4 }
0x1028   :  { %4247 = vmatprep.subr.bf16.mxu1 %v4246_v28  ;;  %4251 = vmatprep.subr.bf16.mxu0 %v4246_v28 }
0x1029   :  { %4249 = vmatpush3.bf16.msra.mxu1 %v4246_v28  ;;  %4253 = vmatpush3.bf16.msra.mxu0 %v4246_v28 }
0x102a   :  { %4255 = vmatprep.subr.bf16.mxu1 %v4254_v6 }
0x102c   :  { %4030 = vmatmul.mubr.msk.f32.vlgmr.msra.gmra.mrb[22].mxu1 %vm254_vm0, %v4749_v27  ;;  %4040 = vmatmul.mubr.msk.f32.vlgmr.msra.gmra.mrb[22].mxu0 %vm254_vm0, %v4739_v23  ;;  %v2595_v27 = vld [vmem:[%s5139_s15] sm:$0xff] }
0x102d   :  { %4032 = vmatprep.mubr.msk.f32.mxu1 %vm254_vm0, %v4764_v32  ;;  %4042 = vmatprep.mubr.msk.f32.mxu0 %vm254_vm0, %v4736_v22  ;;  %v4262_v23 = vpack.c.bf16 %v2596_v37, %v2595_v27  ;;  %v2598_v32 = vld [vmem:[%s5139_s15 + $0x18] sm:$0xff] }
0x102e   :  { %4257 = vmatpush3.bf16.msra.mxu1 %v4254_v6  ;;  %v4266_v16 = vpack.c.bf16 %v2598_v32, %v2597_v11 }
0x102f   :  { %4259 = vmatprep.subr.bf16.mxu1 %v4258_v30 }
0x1030   :  { %4033 = vmatmul.mubr.msk.f32.gmra.mrb[24].mxu1 %vm254_vm0, %v4761_v31  ;;  %4043 = vmatmul.mubr.msk.f32.gmra.mrb[24].mxu0 %vm254_vm0, %v4746_v26  ;;  %v2603_v31 = vld [vmem:[%s5139_s15 + $0x40] sm:$0xff] }
0x1031   :  { %v4270_v33 = vpack.c.bf16 %v2604_v20, %v2603_v31 }
0x1032   :  { %4261 = vmatpush3.bf16.msra.mxu1 %v4258_v30 }
0x1033   :  { %4263 = vmatprep.subr.bf16.mxu1 %v4262_v23 }
0x10ff   :  { %v4031_v19 = vpop.f32.mrb[22].mxu1  ;;  %v4041_v13 = vpop.f32.mrb[22].mxu0 }
0x1100   :  { %v2491_v22 = vpop.f32.mrb[23].mxu1  ;;  %v2576_v15 = vpop.f32.mrb[23].mxu0 }
0x1101   :  { %4053 = vmatprep.mubr.msk.f32.mxu1 %vm770_vm12, %v2576_v15  ;;  %v2993_v15 = vld [vmem:[%s5141_s23 + $0x10] sm:$0xff] }
0x1102   :  { %4054 = vmatmul.mubr.msk.f32.vlgmr.msra.gmra.mrb[26].mxu1 %vm770_vm12, %v4041_v13  ;;  %v2992_v13 = vld [vmem:[%s5141_s23 + $0x8] sm:$0xff] }
0x1103   :  { %v4034_v26 = vpop.f32.mrb[24].mxu1  ;;  %v4044_v21 = vpop.f32.mrb[24].mxu0  ;;  %4265 = vmatpush3.bf16.msra.mxu1 %v4262_v23 }
0x1104   :  { %v2501_v24 = vpop.f32.mrb[25].mxu1  ;;  %v2586_v29 = vpop.f32.mrb[25].mxu0  ;;  %4267 = vmatprep.subr.bf16.mxu1 %v4266_v16 }
0x1105   :  { %4056 = vmatprep.mubr.msk.f32.mxu1 %vm770_vm12, %v2586_v29 }
0x1106   :  { %4057 = vmatmul.mubr.msk.f32.gmra.mrb[28].mxu1 %vm770_vm12, %v4044_v21 }
0x1107   :  { %4269 = vmatpush3.bf16.msra.mxu1 %v4266_v16  ;;  %4067 = vmatprep.mubr.msk.f32.mxu1 %vm770_vm12, %v2491_v22  ;;  %v2994_v16 = vld [vmem:[%s5141_s23 + $0x18] sm:$0xff] }
0x1108   :  { %4271 = vmatprep.subr.bf16.mxu1 %v4270_v33  ;;  %v4282_v31 = vpack.c.bf16 %v2994_v16, %v2993_v15 }
0x110a   :  { %4068 = vmatmul.mubr.msk.f32.vlgmr.msra.gmra.mrb[26].mxu1 %vm770_vm12, %v4031_v19  ;;  %v2991_v19 = vld [vmem:[%s5141_s23] sm:$0xff] }
0x110b   :  { %4070 = vmatprep.mubr.msk.f32.mxu1 %vm770_vm12, %v2501_v24  ;;  %4273 = vmatpush3.bf16.msra.mxu1 %v4270_v33  ;;  %v4278_v22 = vpack.c.bf16 %v2992_v13, %v2991_v19  ;;  %v3617_v19 = vld [vmem:[%s5145_s28] ss:$0 sm:$0xff] }
0x110c   :  { %4275 = vmatprep.subr.bf16.mxu1 %v4274_v34 }
0x110d   :  { %4279 = vmatprep.subr.bf16.mxu0 %v4278_v22 }
0x110e   :  { %4071 = vmatmul.mubr.msk.f32.gmra.mrb[28].mxu1 %vm770_vm12, %v4034_v26  ;;  %4281 = vmatpush3.bf16.msra.mxu0 %v4278_v22 }
0x110f   :  { %4277 = vmatpush3.bf16.msra.mxu1 %v4274_v34  ;;  %4081 = vmatprep.mubr.msk.f32.mxu1 %vm770_vm12, %v2421_v40 }
0x1110   :  { %4283 = vmatprep.subr.bf16.mxu0 %v4282_v31 }
0x1112   :  { %4082 = vmatmul.mubr.msk.f32.vlgmr.msra.gmra.mrb[26].mxu1 %vm770_vm12, %v2422_v43  ;;  %4285 = vmatpush3.bf16.msra.mxu0 %v4282_v31  ;;  %v3605_v43 = vld [vmem:[%s5142_s22] ss:$0 sm:$0xff] }
0x1113   :  { %4084 = vmatprep.mubr.msk.f32.mxu1 %vm770_vm12, %v2423_v45 }
0x1116   :  { %4085 = vmatmul.mubr.msk.f32.gmra.mrb[28].mxu1 %vm770_vm12, %v2424_v14 }
0x11e5   :  { %v4083_v48 = vpop.f32.mrb[26].mxu1 }
0x11e6   :  { %v2910_v5 = vadd.f32 %v4083_v48, %v3604_v41  ;;  %v2879_v47 = vpop.f32.mrb[27].mxu1 }
0x11e7   :  { %v2909_v7 = vadd.f32 %v3604_v41, %v2879_v47 }
0x11e8   :  { %v2914_v49 = vmax.f32 %v2910_v5, 0.0 }
0x11e9   :  { %v2913_v12 = vmax.f32 %v2909_v7, 0.0  ;;  %v4086_v50 = vpop.f32.mrb[28].mxu1 }
0x11ea   :  { %v2912_v51 = vadd.f32 %v4086_v50, %v3604_v41  ;;  %v2889_v46 = vpop.f32.mrb[29].mxu1  ;;  %v2922_v25 = vsel %vm770_vm12, %v2914_v49, 0.0 }
0x11eb   :  { %v2911_v52 = vadd.f32 %v3604_v41, %v2889_v46  ;;  %2923 = vadd.xlane.f32.xlu0 %v2922_v25  ;;  %v2919_v53 = vsel %vm770_vm12, %v2913_v12, 0.0  ;;  %v3606_v41 = vld [vmem:[%s5143_s26] ss:$0 sm:$0xff] }
0x11ec   :  { %v2916_v54 = vmax.f32 %v2912_v51, 0.0  ;;  %2920 = vadd.xlane.f32.xlu1 %v2919_v53 }
0x11ed   :  { %v2915_v17 = vmax.f32 %v2911_v52, 0.0 }
0x11ee   :  { %v2928_v55 = vsel %vm770_vm12, %v2916_v54, 0.0 }
0x11ef   :  { %2929 = vadd.xlane.f32.xlu0 %v2928_v55  ;;  %v2925_v56 = vsel %vm770_vm12, %v2915_v17, 0.0 }
0x11f0   :  { %2926 = vadd.xlane.f32.xlu1 %v2925_v56 }
0x1278   :  { %v2924_v57 = vpop.xlane.xlu0 %2923 }
0x1279   :  { %v2932_v58 = vmul.f32 0.03125, %v2924_v57  ;;  %v2921_v59 = vpop.xlane.xlu1 %2920 }
0x127a   :  { %v2931_v60 = vmul.f32 0.03125, %v2921_v59 }
0x127b   :  { %v2936_v61 = vsub.f32 %v2914_v49, %v2932_v58 }
0x127c   :  { %v2935_v62 = vsub.f32 %v2913_v12, %v2931_v60  ;;  %v2930_v63 = vpop.xlane.xlu0 %2929 }
0x127d   :  { %v2934_v0 = vmul.f32 0.03125, %v2930_v63  ;;  %v2927_v2 = vpop.xlane.xlu1 %2926  ;;  %v2940_v3 = vmul.f32 %v2936_v61, %v2936_v61 }
0x127e   :  { %v2933_v28 = vmul.f32 0.03125, %v2927_v2  ;;  %v2939_v6 = vmul.f32 %v2935_v62, %v2935_v62 }
0x127f   :  { %v2938_v8 = vsub.f32 %v2916_v54, %v2934_v0  ;;  %v2946_v10 = vsel %vm770_vm12, %v2940_v3, 0.0  ;;  %v3607_v54 = vld [vmem:[#allocation2] ss:$0 sm:$0xff]  ;;  %v3176_v3 = vld [vmem:[%s5144_s1 + $0x10] sm:$0xff] }
0x1280   :  { %v2937_v30 = vsub.f32 %v2915_v17, %v2933_v28  ;;  %2947 = vadd.xlane.f32.xlu0 %v2946_v10  ;;  %v2943_v27 = vsel %vm770_vm12, %v2939_v6, 0.0  ;;  %v3177_v28 = vld [vmem:[%s5144_s1 + $0x18] sm:$0xff] }
0x1281   :  { %2944 = vadd.xlane.f32.xlu1 %v2943_v27  ;;  %v2942_v37 = vmul.f32 %v2938_v8, %v2938_v8  ;;  %v4298_v6 = vpack.c.bf16 %v3177_v28, %v3176_v3 }
0x1282   :  { %v2941_v23 = vmul.f32 %v2937_v30, %v2937_v30 }
0x1283   :  { %v2952_v11 = vsel %vm770_vm12, %v2942_v37, 0.0  ;;  %v3614_v37 = vld [vmem:[%s5144_s1 + $0x20] ss:$0 sm:$0xff] }
0x1284   :  { %2953 = vadd.xlane.f32.xlu0 %v2952_v11  ;;  %v2949_v32 = vsel %vm770_vm12, %v2941_v23, 0.0 }
0x1285   :  { %2950 = vadd.xlane.f32.xlu1 %v2949_v32 }
0x130d   :  { %v2948_v20 = vpop.xlane.xlu0 %2947 }
0x130e   :  { %v2956_v26 = vmul.f32 0.03125, %v2948_v20  ;;  %v2945_v21 = vpop.xlane.xlu1 %2944 }
0x130f   :  { %v2955_v24 = vmul.f32 0.03125, %v2945_v21 }
0x1310   :  { %v2960_v29 = vadd.f32 1e-05, %v2956_v26 }
0x1311   :  { %v2959_v33 = vadd.f32 1e-05, %v2955_v24  ;;  %v2954_v38 = vpop.xlane.xlu0 %2953 }
0x1312   :  { %4411 = vrsqrt.f32 %v2960_v29  ;;  %v2958_v39 = vmul.f32 0.03125, %v2954_v38  ;;  %v2951_v34 = vpop.xlane.xlu1 %2950 }
0x1313   :  { %4413 = vrsqrt.f32 %v2959_v33  ;;  %v2957_v36 = vmul.f32 0.03125, %v2951_v34 }
0x1314   :  { %v2962_v18 = vadd.f32 1e-05, %v2958_v39 }
0x1315   :  { %v2961_v40 = vadd.f32 1e-05, %v2957_v36 }
0x1316   :  { %4415 = vrsqrt.f32 %v2962_v18 }
0x1317   :  { %4417 = vrsqrt.f32 %v2961_v40  ;;  %v3331_v40 = vld [vmem:[%s4695_s6] sm:$0xff] }
0x131c   :  { %v4412_v42 = vpop.eup %4411 }
0x131d   :  { %v4414_v44 = vpop.eup %4413  ;;  %v2968_v45 = vmul.f32 %v4412_v42, %v2936_v61  ;;  %v3332_v42 = vld [vmem:[%s4695_s6 + $0x8] sm:$0xff] }
0x131e   :  { %v2967_v14 = vmul.f32 %v4414_v44, %v2935_v62  ;;  %v3174_v62 = vld [vmem:[%s5144_s1] sm:$0xff]  ;;  %v3333_v44 = vld [vmem:[%s4695_s6 + $0x10] sm:$0xff] }
0x131f   :  { %v2978_v48 = vmul.f32 %v3605_v43, %v2968_v45  ;;  %v3334_v45 = vld [vmem:[%s4695_s6 + $0x18] sm:$0xff]  ;;  %s4491_s6 = smov [#allocation3]  }
0x1320   :  { %v4416_v5 = vpop.eup %4415  ;;  %v2977_v47 = vmul.f32 %v3605_v43, %v2967_v14  ;;  %v4306_v14 = vpack.c.bf16 %v3334_v45, %v3333_v44  ;;  %s3435_s10 = sshll.u32 %s4491_s6, 4  ;;  %s3436_s10 = int_to_ptr.vmem [resolvable:$true] %s3435_s10 }
0x1321   :  { %v4418_v7 = vpop.eup %4417  ;;  %v2970_v49 = vmul.f32 %v4416_v5, %v2938_v8  ;;  %v2988_v51 = vadd.f32 %v3606_v41, %v2978_v48  ;;  %p4428_p1 = scmp.lt.s32.totalorder %s3436_s10, %s3436_s10 }
0x1322   :  { %v2987_v12 = vadd.f32 %v3606_v41, %v2977_v47  ;;  %v2969_v50 = vmul.f32 %v4418_v7, %v2937_v30 }
0x1323   :  { %v2980_v46 = vmul.f32 %v3605_v43, %v2970_v49 }
0x1324   :  { %4095 = vmatprep.mubr.msk.f32.mxu0 %vm770_vm12, %v2987_v12  ;;  %v2979_v25 = vmul.f32 %v3605_v43, %v2969_v50  ;;  %v4302_v43 = vpack.c.bf16 %v3332_v42, %v3331_v40  ;;  %v3618_v50 = vld [vmem:[%s4685_s4] ss:$0 sm:$0xff]  ;;  %s4423_s4 = scalar_lea.vmem %s3436_s10, 256 }
0x1325   :  { %4096 = vmatmul.mubr.msk.f32.vlgmr.msra.gmra.mrb[26].mxu0 %vm770_vm12, %v2988_v51  ;;  %v2990_v53 = vadd.f32 %v3606_v41, %v2980_v46  ;;  %p4424_p0 = scmp.ne.s32.totalorder %s3436_s10, %s4423_s4  ;;  %p4429_p2 = scmp.lt.s32.totalorder %s4423_s4, %s4423_s4 }
0x1326   :  { %v2989_v52 = vadd.f32 %v3606_v41, %v2979_v25  ;;  %4303 = vmatprep.subr.bf16.mxu1 %v4302_v43 }
0x1327   :  { %4305 = vmatpush3.bf16.msra.mxu1 %v4302_v43  ;;  %p4430_p3 = por %p4429_p2, %p4428_p1 }
0x1328   :  { %4098 = vmatprep.mubr.msk.f32.mxu0 %vm770_vm12, %v2989_v52  ;;  %4307 = vmatprep.subr.bf16.mxu1 %v4306_v14  ;;  %v3619_v52 = vld [vmem:[%s5146_s2] ss:$0 sm:$0xff] }
0x1329   :  { %4099 = vmatmul.mubr.msk.f32.gmra.mrb[28].mxu0 %vm770_vm12, %v2990_v53  ;;  %p4431_p4 = pnand %p4430_p3, %p4424_p0 }
0x132a   :  { %4109 = vmatprep.mubr.msk.f32.mxu0 %vm770_vm12, %v4806_v9  ;;  %v3175_v9 = vld [vmem:[%s5144_s1 + $0x8] sm:$0xff] }
0x132b   :  { %v4294_v2 = vpack.c.bf16 %v3175_v9, %v3174_v62  ;;  %4309 = vmatpush3.bf16.msra.mxu1 %v4306_v14 }
0x13f8   :  { %v4097_v17 = vpop.f32.mrb[26].mxu0 }
0x13f9   :  { %v3086_v55 = vadd.f32 %v4097_v17, %v3607_v54  ;;  %v3080_v56 = vpop.f32.mrb[27].mxu0 }
0x13fa   :  { %v3081_v57 = vadd.f32 %v3607_v54, %v3080_v56  ;;  %v3620_v56 = vld [vmem:[%s4700_s27] ss:$0 sm:$0xff] }
0x13fb   :  { %3427 = vst.msk [vmem:[%s4710_s16 + $0x8] sm:$0xff] %vm3425_vm15, %v3086_v55 }
0x13fc   :  { %v4286_v58 = vpack.c.bf16 %v3086_v55, %v3081_v57  ;;  %3426 = vst.msk [vmem:[%s4710_s16] sm:$0xff] %vm3425_vm15, %v3081_v57  ;;  %v4100_v59 = vpop.f32.mrb[28].mxu0 }
0x13fd   :  { %v3096_v60 = vadd.f32 %v4100_v59, %v3607_v54  ;;  %v3090_v61 = vpop.f32.mrb[29].mxu0 }
0x13fe   :  { %v3091_v63 = vadd.f32 %v3607_v54, %v3090_v61  ;;  %4287 = vmatprep.subr.bf16.mxu0 %v4286_v58 }
0x13ff   :  { %3429 = vst.msk [vmem:[%s4710_s16 + $0x18] sm:$0xff] %vm3425_vm15, %v3096_v60  ;;  %4289 = vmatpush3.bf16.msra.mxu0 %v4286_v58 }
0x1400   :  { %v4290_v0 = vpack.c.bf16 %v3096_v60, %v3091_v63  ;;  %3428 = vst.msk [vmem:[%s4710_s16 + $0x10] sm:$0xff] %vm3425_vm15, %v3091_v63 }
0x1402   :  { %4291 = vmatprep.subr.bf16.mxu0 %v4290_v0 }
0x1403   :  { %4293 = vmatpush3.bf16.msra.mxu0 %v4290_v0 }
0x1404   :  { %4295 = vmatprep.subr.bf16.mxu0 %v4294_v2 }
0x1406   :  { %4110 = vmatmul.mubr.msk.f32.vlgmr.msra.gmra.mrb[30].mxu0 %vm770_vm12, %v4829_v35 }
0x1407   :  { %4297 = vmatpush3.bf16.msra.mxu0 %v4294_v2  ;;  %4120 = vmatprep.mubr.msk.f32.mxu0 %vm770_vm12, %v4980_v4 }
0x1408   :  { %4299 = vmatprep.subr.bf16.mxu0 %v4298_v6 }
0x140b   :  { %4301 = vmatpush3.bf16.msra.mxu0 %v4298_v6 }
0x140e   :  { %4121 = vmatmul.mubr.msk.f32.vlgmr.msra.gmra.mrb[32].mxu0 %vm770_vm12, %v4975_v1 }
0x14d9   :  { %v4111_v8 = vpop.f32.mrb[30].mxu0 }
0x14da   :  { %3186 = vperm.xlu0 %4385, %v4111_v8   ;;  %v3165_v10 = vpop.f32.mrb[31].mxu0 }
0x14db   :  { %3181 = vperm.xlu1 %4386, %v3165_v10  }
0x14e1   :  { %v4122_v30 = vpop.f32.mrb[32].mxu0 }
0x14e2   :  { %v3267_v27 = vpop.f32.mrb[33].mxu0 }
0x1559   :  { %v3187_v23 = vpop.permute.xlu0 %3186 }
0x155a   :  { %v3194_v11 = vmul.f32 %v3614_v37, %v3187_v23  ;;  %v3182_v35 = vpop.permute.xlu1 %3181 }
0x155b   :  { %v3193_v32 = vmul.f32 %v3614_v37, %v3182_v35 }
0x155c   :  { %v3273_v13 = vadd.f32 %v4122_v30, %v3194_v11 }
0x155d   :  { %v3268_v22 = vadd.f32 %v3267_v27, %v3193_v32 }
0x155e   :  { %v3284_v4 = vadd.f32 %v3617_v19, %v3273_v13 }
0x155f   :  { %v3283_v15 = vadd.f32 %v3617_v19, %v3268_v22 }
0x1560   :  { %v3286_v16 = vmax.f32 %v3284_v4, 0.0 }
0x1561   :  { %v3285_v31 = vmax.f32 %v3283_v15, 0.0 }
0x1562   :  { %v3292_v1 = vsel %vm770_vm12, %v3286_v16, 0.0 }
0x1563   :  { %3293 = vadd.xlane.f32.xlu0 %v3292_v1  ;;  %v3289_v20 = vsel %vm770_vm12, %v3285_v31, 0.0 }
0x1564   :  { %3290 = vadd.xlane.f32.xlu1 %v3289_v20 }
0x15f0   :  { %v3294_v26 = vpop.xlane.xlu0 %3293 }
0x15f1   :  { %v3296_v21 = vmul.f32 0.03125, %v3294_v26  ;;  %v3291_v24 = vpop.xlane.xlu1 %3290 }
0x15f2   :  { %v3295_v29 = vmul.f32 0.03125, %v3291_v24 }
0x15f3   :  { %v3298_v33 = vsub.f32 %v3286_v16, %v3296_v21 }
0x15f4   :  { %v3297_v38 = vsub.f32 %v3285_v31, %v3295_v29 }
0x15f5   :  { %v3300_v39 = vmul.f32 %v3298_v33, %v3298_v33 }
0x15f6   :  { %v3299_v34 = vmul.f32 %v3297_v38, %v3297_v38 }
0x15f7   :  { %v3304_v36 = vsel %vm770_vm12, %v3300_v39, 0.0 }
0x15f8   :  { %3305 = vadd.xlane.f32.xlu0 %v3304_v36  ;;  %v3301_v18 = vsel %vm770_vm12, %v3299_v34, 0.0 }
0x15f9   :  { %3302 = vadd.xlane.f32.xlu1 %v3301_v18 }
0x1685   :  { %v3306_v41 = vpop.xlane.xlu0 %3305 }
0x1686   :  { %v3308_v48 = vmul.f32 0.03125, %v3306_v41  ;;  %v3303_v5 = vpop.xlane.xlu1 %3302 }
0x1687   :  { %v3307_v47 = vmul.f32 0.03125, %v3303_v5 }
0x1688   :  { %v3310_v7 = vadd.f32 1e-05, %v3308_v48 }
0x1689   :  { %v3309_v49 = vadd.f32 1e-05, %v3307_v47 }
0x168a   :  { %4419 = vrsqrt.f32 %v3310_v7 }
0x168b   :  { %4421 = vrsqrt.f32 %v3309_v49 }
0x1694   :  { %v4420_v12 = vpop.eup %4419 }
0x1695   :  { %v4422_v51 = vpop.eup %4421  ;;  %v3314_v46 = vmul.f32 %v4420_v12, %v3298_v33 }
0x1696   :  { %v3313_v25 = vmul.f32 %v4422_v51, %v3297_v38 }
0x1697   :  { %v3322_v53 = vmul.f32 %v3618_v50, %v3314_v46 }
0x1698   :  { %v3321_v54 = vmul.f32 %v3618_v50, %v3313_v25 }
0x1699   :  { %v3330_v55 = vadd.f32 %v3619_v52, %v3322_v53 }
0x169a   :  { %v3329_v17 = vadd.f32 %v3619_v52, %v3321_v54 }
0x169c   :  { %4131 = vmatprep.mubr.msk.f32.mxu1 %vm770_vm12, %v3329_v17 }
0x169d   :  { %4132 = vmatmul.mubr.msk.f32.vlgmr.msra.gmra.mrb[30].mxu1 %vm770_vm12, %v3330_v55 }
0x1770   :  { %v4133_v57 = vpop.f32.mrb[30].mxu1 }
0x1771   :  { %v3420_v58 = vadd.f32 %v4133_v57, %v3620_v56  ;;  %v3414_v59 = vpop.f32.mrb[31].mxu1 }
0x1772   :  { %v3415_v60 = vadd.f32 %v3620_v56, %v3414_v59 }
0x1773   :  { %3424 = vst.msk [vmem:[#allocation3 + $0x8] sm:$0xff] %vm254_vm0, %v3420_v58 }
0x1774   :  { %3423 = vst.msk [vmem:[#allocation3] sm:$0xff] %vm254_vm0, %v3415_v60 }
0x1775   :  { %4434 = shalt.err (!%p4431_p4)
}
0x1776   :  { %s4435_s27 = scalar_lea.hbm %s4705_s7, 256 }
0x1777   :  { %p4436_p5 = scmp.ne.s32.totalorder %s4705_s7, %s4435_s27  ;;  %p4439_p6 = scmp.lt.u32.totalorder %s4435_s27, %s4705_s7 }
0x1779   :  { %p4441_p7 = pnand %p4439_p6, %p4436_p5 }
0x177b   :  { %4444 = shalt.err (!%p4441_p7)
}
0x177c   :  { %s4492_s11 = smov 128   ;;  %s4493_s16 = smov 8  }
0x177d   :  { %3441 = dma.vmem_to_hbm [thread:$0]  %s3436_s10, 256, %s4705_s7, [#allocation4], %s4492_s11, %s4492_s11, %s4493_s16  }
0x177e   :  { %4445 = dma.done.wait [#allocation4], 256  }
0x177f   :  { %4446 = vsyncadd [#allocation4], 4294967040 }
0x1780   :  { %3449 = vsyncpa [#allocation4], 1 }

</bundles_post_ra>
